<compile_context>
chip_gen: v6e
topology: v6e:2x2x1
jax: 0.10.0
libtpu: 0.0.40
codegen_flags: <defaults>
</compile_context>

<pallas_src>
import functools
import math

import jax
import jax.numpy as jnp
from jax.experimental import pallas as pl
from jax.experimental.pallas import tpu as pltpu


def _nonlocal_kernel(curr_ref, theta_ref, adja_ref, kbias_ref,
                     wgp_ref, bgp_ref, watt_ref, batt_ref, out_ref, *, width):
    """One grid step: attention of `fb` adjacent frames against the current frame.

    Per-step shapes:
      curr_ref : (C, S)      residual, channels-major (lane-dense)
      theta_ref: (S, Ci)     pre-projected, pre-scaled query (shared)
      adja_ref : (fb, C, S)  packed adjacent frames
      kbias_ref: (1, S)      additive key mask (0 on 2x2 top-left lanes, -1e30 else)
      wgp_ref  : (2Ci, C)    fused g|phi 1x1-conv weight
      bgp_ref  : (2Ci, 1)
      watt_ref : (CPAD, Ci)  att_layer weight, rows zero-padded to CPAD
      batt_ref : (C, 1)
      out_ref  : (fb, C, S)
    """
    f32 = jnp.float32
    fb, c, s = adja_ref.shape
    ci = theta_ref.shape[1]

    theta = theta_ref[...]                      # (S, Ci), already * 1/sqrt(Ci)
    kbias = kbias_ref[...]                      # (1, S)
    curr = curr_ref[...].astype(f32)            # (C, S)
    batt = batt_ref[...]                        # (C, 1)
    wgp = wgp_ref[...]
    bgp = bgp_ref[...]
    watt = watt_ref[...]

    for f in range(fb):                         # static unroll over packed frames
        # ---- fused g|phi projection of this adjacent frame (full resolution).
        gp = jnp.dot(wgp, adja_ref[f].astype(f32),
                     preferred_element_type=f32) + bgp                  # (2Ci, S)

        # ---- 2x2 max-pool, fully in-lane on the XLU (exact shifts, no matmul).
        # roll by (S-1) fetches lane j+1, roll by (S-W) fetches lane j+W.
        # Wrap-around / row-crossing artifacts land only on non-top-left lanes,
        # which kbias removes from the softmax (zero attention weight), so they
        # never influence the result.  Keep mask and pooling coupled.
        pair = jnp.maximum(gp, pltpu.roll(gp, shift=s - 1, axis=1))
        pooled = jnp.maximum(pair, pltpu.roll(pair, shift=s - width, axis=1))
        g_pool = pooled[:ci]                                             # (Ci, S)
        phi_pool = pooled[ci:]                                           # (Ci, S)

        # ---- att_layer weight folded into the value: v = W_att^T @ g_pool,
        # zero-padded to CPAD rows (free on the 128-lane-wide MXU) so the final
        # transpose below is a fully vreg-aligned (S, CPAD) -> (CPAD, S).
        v_pad = jnp.dot(watt, g_pool, preferred_element_type=f32)        # (CPAD, S)

        # ---- attention logits over all S key lanes; invalid lanes get -1e30.
        logits = jnp.dot(theta, phi_pool, preferred_element_type=f32) + kbias
        m = jnp.max(logits, axis=-1, keepdims=True)
        e = jnp.exp(logits - m)                                          # (S, S)
        denom = jnp.sum(e, axis=-1, keepdims=True)
        r = pl.reciprocal(denom, approx=True)                            # EUP slot
        r = r * (2.0 - denom * r)                                        # Newton -> f32 accuracy

        # ---- aggregate with the UNNORMALIZED weights; the dot_general's
        # transposed operand is the small (CPAD, S) value, never an (S, S)
        # matrix.  Softmax denominator folded in afterwards (S*CPAD muls).
        y = jnp.einsum('qk,ck->qc', e, v_pad, preferred_element_type=f32)  # (S, CPAD)
        att = jnp.transpose(y * r)[:c]                                      # (C, S)

        # ---- residual + bias, lane-dense (C, S) store.
        out_ref[f] = (curr + att + batt).astype(out_ref.dtype)


def _frames_per_block(n, c):
    """Frames packed per grid step.

    Amortizes per-step pipeline overhead and fills the 8-sublane vreg height,
    but only while >= 2 grid blocks remain so both TensorCores of a v7x chip
    can be fed via the 'parallel' frame axis.
    """
    fb = 1
    for cand in range(2, n + 1):
        if n % cand == 0 and cand * c <= 8 and n // cand >= 2:
            fb = cand
    return fb


def non_local_aggregation(curr_x, adja_x, params):
    """curr_x: (1, C, H, W); adja_x: (N, C, H, W)  -> (N, C, H, W)."""
    n, c, h, w = adja_x.shape
    ci = params['w_theta'].shape[1]
    if h % 2 or w % 2:
        raise ValueError("H and W must be even (2x2 max-pool).")
    s = h * w
    fb = _frames_per_block(n, c)
    assert n % fb == 0
    cpad = ((max(c, 1) + 127) // 128) * 128   # value rows padded for an aligned transpose

    # ---- layout plumbing + tiny precomputations (all cheap XLA ops) ----
    curr_cs = curr_x[0].reshape(c, s).astype(jnp.float32)                 # (C, S) residual
    # theta depends only on the current frame: project + scale ONCE here instead
    # of once per grid step / per core inside the kernel.
    theta_sc = (jnp.dot(curr_cs.T, params['w_theta'].astype(jnp.float32))
                + params['b_theta']) * (1.0 / math.sqrt(ci))
    theta_sc = theta_sc.astype(jnp.float32)                               # (S, Ci)

    adja_cs = adja_x.reshape(n, c, s)                                     # (N, C, S) contiguous

    # Additive key mask: 0 at the top-left lane of each 2x2 window, -1e30 else.
    # NOTE: coupled with the roll-based pooling inside the kernel.
    sid = jnp.arange(s, dtype=jnp.int32)
    valid = ((sid % 2) == 0) & (((sid // w) % 2) == 0)
    key_bias = jnp.where(valid, 0.0, -1e30).astype(jnp.float32).reshape(1, s)

    # Tiny weight transposes / concatenation / padding.
    w_gp_t = jnp.concatenate([params['w_g'], params['w_phi']], axis=1).T  # (2Ci, C)
    b_gp = jnp.concatenate([params['b_g'], params['b_phi']],
                           axis=1).reshape(2 * ci, 1)                     # (2Ci, 1)
    w_att_pad = jnp.zeros((cpad, ci), jnp.float32).at[:c, :].set(
        params['w_att'].T.astype(jnp.float32))                            # (CPAD, Ci)
    b_att = params['b_att'].reshape(c, 1).astype(jnp.float32)             # (C, 1)

    def bcast(shape):
        nd = len(shape)
        return pl.BlockSpec(shape, lambda i, _nd=nd: (0,) * _nd)

    # Explicit VMEM budget (matters most on v7x: 64 MiB physical, 32 MiB scoped
    # default).  Dominant per-step live set is logits + e (~2*S^2*4B).
    per_step = 4 * s * s * 4 + 2 * cpad * s * 4 + 4 * fb * c * s * 4 + 8 * s * 4
    vmem_limit = int(min(max(2 * per_step, 32 * 1024 * 1024), 64 * 1024 * 1024))

    out = pl.pallas_call(
        functools.partial(_nonlocal_kernel, width=w),
        out_shape=jax.ShapeDtypeStruct((n, c, s), adja_x.dtype),
        grid=(n // fb,),
        in_specs=[
            bcast((c, s)),                                        # curr_cs (residual)
            bcast((s, ci)),                                       # theta_sc (query)
            pl.BlockSpec((fb, c, s), lambda i: (i, 0, 0)),        # adja_cs
            bcast((1, s)),                                        # key_bias
            bcast((2 * ci, c)), bcast((2 * ci, 1)),               # fused g|phi
            bcast((cpad, ci)), bcast((c, 1)),                     # att_layer (padded) + bias
        ],
        out_specs=pl.BlockSpec((fb, c, s), lambda i: (i, 0, 0)),
        compiler_params=pltpu.CompilerParams(
            # 'parallel' lets a 2-TC chip (v7x) shard the frame axis; if profiling
            # ever shows one core idle, switch to pltpu.CORE_PARALLEL / core_map.
            dimension_semantics=("parallel",),
            vmem_limit_bytes=vmem_limit),
    )(curr_cs, theta_sc, adja_cs, key_bias, w_gp_t, b_gp, w_att_pad, b_att)

    return out.reshape(n, c, h, w)


def _reference(curr_x, adja_x, p):
    """Pure-JAX mirror of the PyTorch forward (for verification)."""
    n, c, h, w = adja_x.shape
    ci = p['w_theta'].shape[1]

    def conv1x1(x, wmat, b):                                          # NCHW
        return jnp.einsum('nchw,co->nohw', x, wmat) + b.reshape(1, -1, 1, 1)

    def maxpool2(x):                                                  # NCHW
        n_, c_, h_, w_ = x.shape
        return x.reshape(n_, c_, h_ // 2, 2, w_ // 2, 2).max(axis=(3, 5))

    g_x = maxpool2(conv1x1(adja_x, p['w_g'], p['b_g'])).reshape(n, ci, -1)
    g_x = jnp.transpose(g_x, (0, 2, 1))
    theta_x = conv1x1(curr_x, p['w_theta'], p['b_theta']).reshape(1, ci, -1)
    theta_x = jnp.transpose(theta_x, (0, 2, 1))
    phi_x = maxpool2(conv1x1(adja_x, p['w_phi'], p['b_phi'])).reshape(n, ci, -1)
    pw = jnp.matmul(theta_x, phi_x) / math.sqrt(ci)
    pw = jax.nn.softmax(pw, axis=-1)
    y = jnp.matmul(pw, g_x)
    y = jnp.transpose(y, (0, 2, 1)).reshape(n, ci, h, w)
    att = conv1x1(y, p['w_att'], p['b_att'])
    return curr_x + att


if __name__ == "__main__":
    # Module config: in_channels=4, reduction=2 -> inter_channels=2
    N, C, H, W = 2, 4, 16, 16
    Ci = C // 2

    key = jax.random.PRNGKey(0)
    k_curr, k_adja, kg, kth, kph, katt = jax.random.split(key, 6)

    curr_x = jax.random.normal(k_curr, (1, C, H, W), jnp.float32)
    adja_x = jax.random.normal(k_adja, (N, C, H, W), jnp.float32)

    # Deterministic parameter init mirroring init_weights():
    #   g / theta / phi: normal(std=0.01), bias=0
    #   att_layer:       normal(std=1.0),  bias=0
    params = {
        'w_g':     0.01 * jax.random.normal(kg,  (C, Ci), jnp.float32),
        'b_g':     jnp.zeros((1, Ci), jnp.float32),
        'w_theta': 0.01 * jax.random.normal(kth, (C, Ci), jnp.float32),
        'b_theta': jnp.zeros((1, Ci), jnp.float32),
        'w_phi':   0.01 * jax.random.normal(kph, (C, Ci), jnp.float32),
        'b_phi':   jnp.zeros((1, Ci), jnp.float32),
        'w_att':   1.0 * jax.random.normal(katt, (Ci, C), jnp.float32),
        'b_att':   jnp.zeros((1, C), jnp.float32),
    }

    out = non_local_aggregation(curr_x, adja_x, params)
    out = jax.block_until_ready(out)

    ref = jax.block_until_ready(_reference(curr_x, adja_x, params))
    assert out.shape == (N, C, H, W)
    assert jnp.allclose(out, ref, rtol=1e-5, atol=2e-5), (
        float(jnp.max(jnp.abs(out - ref))))

    print("KERNEL_OK")
</pallas_src>

<mosaic_0001>
module attributes {stable_mosaic.version = 11 : i64} {
  func.func @_nonlocal_kernel(%arg0: i32, %arg1: memref<4x256xf32, #tpu.memory_space<vmem>>, %arg2: memref<256x2xf32, #tpu.memory_space<vmem>>, %arg3: memref<1x4x256xf32, #tpu.memory_space<vmem>>, %arg4: memref<1x256xf32, #tpu.memory_space<vmem>>, %arg5: memref<4x4xf32, #tpu.memory_space<vmem>>, %arg6: memref<4x1xf32, #tpu.memory_space<vmem>>, %arg7: memref<128x2xf32, #tpu.memory_space<vmem>>, %arg8: memref<4x1xf32, #tpu.memory_space<vmem>>, %arg9: memref<1x4x256xf32, #tpu.memory_space<vmem>>) attributes {dimension_semantics = [#tpu.dimension_semantics<parallel>], iteration_bounds = array<i64: 2>, scalar_prefetch = 0 : i64, scratch_operands = 0 : i64, tpu.core_type = #tpu.core_type<tc>, window_params = [{pipeline_mode = #tpu.pipeline_mode<synchronous>, transform_indices = @transform_0, window_bounds = array<i64: 4, 256>}, {pipeline_mode = #tpu.pipeline_mode<synchronous>, transform_indices = @transform_1, window_bounds = array<i64: 256, 2>}, {transform_indices = @transform_2, window_bounds = array<i64: 1, 4, 256>}, {pipeline_mode = #tpu.pipeline_mode<synchronous>, transform_indices = @transform_3, window_bounds = array<i64: 1, 256>}, {pipeline_mode = #tpu.pipeline_mode<synchronous>, transform_indices = @transform_4, window_bounds = array<i64: 4, 4>}, {pipeline_mode = #tpu.pipeline_mode<synchronous>, transform_indices = @transform_5, window_bounds = array<i64: 4, 1>}, {pipeline_mode = #tpu.pipeline_mode<synchronous>, transform_indices = @transform_6, window_bounds = array<i64: 128, 2>}, {pipeline_mode = #tpu.pipeline_mode<synchronous>, transform_indices = @transform_7, window_bounds = array<i64: 4, 1>}, {transform_indices = @transform_8, window_bounds = array<i64: 1, 4, 256>}]} {
    %c0 = arith.constant 0 : index
    %c0_0 = arith.constant 0 : index
    %0 = vector.load %arg2[%c0, %c0_0] : memref<256x2xf32, #tpu.memory_space<vmem>>, vector<256x2xf32>
    %c0_1 = arith.constant 0 : index
    %c0_2 = arith.constant 0 : index
    %1 = vector.load %arg4[%c0_1, %c0_2] : memref<1x256xf32, #tpu.memory_space<vmem>>, vector<1x256xf32>
    %c0_3 = arith.constant 0 : index
    %c0_4 = arith.constant 0 : index
    %2 = vector.load %arg1[%c0_3, %c0_4] : memref<4x256xf32, #tpu.memory_space<vmem>>, vector<4x256xf32>
    %c0_5 = arith.constant 0 : index
    %c0_6 = arith.constant 0 : index
    %3 = vector.load %arg8[%c0_5, %c0_6] : memref<4x1xf32, #tpu.memory_space<vmem>>, vector<4x1xf32>
    %c0_7 = arith.constant 0 : index
    %c0_8 = arith.constant 0 : index
    %4 = vector.load %arg5[%c0_7, %c0_8] : memref<4x4xf32, #tpu.memory_space<vmem>>, vector<4x4xf32>
    %c0_9 = arith.constant 0 : index
    %c0_10 = arith.constant 0 : index
    %5 = vector.load %arg6[%c0_9, %c0_10] : memref<4x1xf32, #tpu.memory_space<vmem>>, vector<4x1xf32>
    %c0_11 = arith.constant 0 : index
    %c0_12 = arith.constant 0 : index
    %6 = vector.load %arg7[%c0_11, %c0_12] : memref<128x2xf32, #tpu.memory_space<vmem>>, vector<128x2xf32>
    %c0_13 = arith.constant 0 : index
    %c0_14 = arith.constant 0 : index
    %c0_15 = arith.constant 0 : index
    %7 = vector.load %arg3[%c0_13, %c0_14, %c0_15] : memref<1x4x256xf32, #tpu.memory_space<vmem>>, vector<1x4x256xf32>
    %8 = vector.shape_cast %7 : vector<1x4x256xf32> to vector<4x256xf32>
    %cst = arith.constant dense<0.000000e+00> : vector<4x256xf32>
    %9 = tpu.matmul %4, %8, %cst {dimension_numbers = #tpu.dot_dimension_numbers<[1], [0], [0], [1], [0, 0, 1, 1], [], []>} : vector<4x4xf32>, vector<4x256xf32>, vector<4x256xf32> -> vector<4x256xf32>
    %10 = vector.broadcast %5 : vector<4x1xf32> to vector<4x256xf32>
    %11 = arith.addf %9, %10 : vector<4x256xf32>
    %c255_i32 = arith.constant 255 : i32
    %12 = tpu.dynamic_rotate %11 by %c255_i32 dim 1 : vector<4x256xf32>, i32 -> vector<4x256xf32>
    %13 = arith.maximumf %11, %12 : vector<4x256xf32>
    %c240_i32 = arith.constant 240 : i32
    %14 = tpu.dynamic_rotate %13 by %c240_i32 dim 1 : vector<4x256xf32>, i32 -> vector<4x256xf32>
    %15 = arith.maximumf %13, %14 : vector<4x256xf32>
    %16 = vector.extract_strided_slice %15 {offsets = [0, 0], sizes = [2, 256], strides = [1, 1]} : vector<4x256xf32> to vector<2x256xf32>
    %17 = vector.extract_strided_slice %15 {offsets = [2, 0], sizes = [2, 256], strides = [1, 1]} : vector<4x256xf32> to vector<2x256xf32>
    %cst_16 = arith.constant dense<0.000000e+00> : vector<128x256xf32>
    %18 = tpu.matmul %6, %16, %cst_16 {dimension_numbers = #tpu.dot_dimension_numbers<[1], [0], [0], [1], [0, 0, 1, 1], [], []>} : vector<128x2xf32>, vector<2x256xf32>, vector<128x256xf32> -> vector<128x256xf32>
    %cst_17 = arith.constant dense<0.000000e+00> : vector<256x256xf32>
    %19 = tpu.matmul %0, %17, %cst_17 {dimension_numbers = #tpu.dot_dimension_numbers<[1], [0], [0], [1], [0, 0, 1, 1], [], []>} : vector<256x2xf32>, vector<2x256xf32>, vector<256x256xf32> -> vector<256x256xf32>
    %20 = vector.broadcast %1 : vector<1x256xf32> to vector<256x256xf32>
    %21 = arith.addf %19, %20 : vector<256x256xf32>
    %cst_18 = arith.constant dense<0xFF800000> : vector<256xf32>
    %22 = vector.multi_reduction <maximumf>, %21, %cst_18 [1] : vector<256x256xf32> to vector<256xf32>
    %23 = vector.shape_cast %22 : vector<256xf32> to vector<256x1xf32>
    %24 = vector.broadcast %23 : vector<256x1xf32> to vector<256x256xf32>
    %25 = arith.subf %21, %24 : vector<256x256xf32>
    %26 = math.exp %25 : vector<256x256xf32>
    %cst_19 = arith.constant dense<0.000000e+00> : vector<256xf32>
    %27 = vector.multi_reduction <add>, %26, %cst_19 [1] : vector<256x256xf32> to vector<256xf32>
    %28 = vector.shape_cast %27 : vector<256xf32> to vector<256x1xf32>
    %29 = tpu.reciprocal %28 {approx = true} : vector<256x1xf32> -> vector<256x1xf32>
    %30 = arith.mulf %28, %29 : vector<256x1xf32>
    %cst_20 = arith.constant 2.000000e+00 : f32
    %31 = vector.broadcast %cst_20 : f32 to vector<256x1xf32>
    %32 = arith.subf %31, %30 : vector<256x1xf32>
    %33 = arith.mulf %29, %32 : vector<256x1xf32>
    "tpu.trace_start"() <{level = 10 : i32, message = "qk,ck->qc"}> : () -> ()
    %cst_21 = arith.constant dense<0.000000e+00> : vector<256x128xf32>
    %34 = tpu.matmul %26, %18, %cst_21 {dimension_numbers = #tpu.dot_dimension_numbers<[1], [1], [0], [0], [0, 0, 1, 0], [], []>} : vector<256x256xf32>, vector<128x256xf32>, vector<256x128xf32> -> vector<256x128xf32>
    "tpu.trace_stop"() : () -> ()
    %35 = vector.broadcast %33 : vector<256x1xf32> to vector<256x128xf32>
    %36 = arith.mulf %34, %35 : vector<256x128xf32>
    %37 = tpu.transpose %36, [1, 0] : vector<256x128xf32> -> vector<128x256xf32>
    %38 = vector.extract_strided_slice %37 {offsets = [0, 0], sizes = [4, 256], strides = [1, 1]} : vector<128x256xf32> to vector<4x256xf32>
    %39 = arith.addf %2, %38 : vector<4x256xf32>
    %40 = vector.broadcast %3 : vector<4x1xf32> to vector<4x256xf32>
    %41 = arith.addf %39, %40 : vector<4x256xf32>
    %c0_22 = arith.constant 0 : index
    %c0_23 = arith.constant 0 : index
    %c0_24 = arith.constant 0 : index
    %42 = vector.load %arg9[%c0_22, %c0_23, %c0_24] : memref<1x4x256xf32, #tpu.memory_space<vmem>>, vector<1x4x256xf32>
    %43 = vector.shape_cast %42 : vector<1x4x256xf32> to vector<4x256xf32>
    %44 = vector.shape_cast %41 : vector<4x256xf32> to vector<1x4x256xf32>
    tpu.vector_store %arg9[%c0_22, %c0_23, %c0_24], %44 {strides = array<i32>} : memref<1x4x256xf32, #tpu.memory_space<vmem>>, vector<1x4x256xf32>,
    return
  }
  func.func @transform_0(%arg0: i32) -> (i32, i32) {
    %c0_i32 = arith.constant 0 : i32
    %c0_i32_0 = arith.constant 0 : i32
    %c0_i32_1 = arith.constant 0 : i32
    return %c0_i32, %c0_i32_0 : i32, i32
  }
  func.func @transform_1(%arg0: i32) -> (i32, i32) {
    %c0_i32 = arith.constant 0 : i32
    %c0_i32_0 = arith.constant 0 : i32
    %c0_i32_1 = arith.constant 0 : i32
    return %c0_i32, %c0_i32_0 : i32, i32
  }
  func.func @transform_2(%arg0: i32) -> (i32, i32, i32) {
    %c0_i32 = arith.constant 0 : i32
    %c0_i32_0 = arith.constant 0 : i32
    %c0_i32_1 = arith.constant 0 : i32
    return %arg0, %c0_i32, %c0_i32_0 : i32, i32, i32
  }
  func.func @transform_3(%arg0: i32) -> (i32, i32) {
    %c0_i32 = arith.constant 0 : i32
    %c0_i32_0 = arith.constant 0 : i32
    %c0_i32_1 = arith.constant 0 : i32
    return %c0_i32, %c0_i32_0 : i32, i32
  }
  func.func @transform_4(%arg0: i32) -> (i32, i32) {
    %c0_i32 = arith.constant 0 : i32
    %c0_i32_0 = arith.constant 0 : i32
    %c0_i32_1 = arith.constant 0 : i32
    return %c0_i32, %c0_i32_0 : i32, i32
  }
  func.func @transform_5(%arg0: i32) -> (i32, i32) {
    %c0_i32 = arith.constant 0 : i32
    %c0_i32_0 = arith.constant 0 : i32
    %c0_i32_1 = arith.constant 0 : i32
    return %c0_i32, %c0_i32_0 : i32, i32
  }
  func.func @transform_6(%arg0: i32) -> (i32, i32) {
    %c0_i32 = arith.constant 0 : i32
    %c0_i32_0 = arith.constant 0 : i32
    %c0_i32_1 = arith.constant 0 : i32
    return %c0_i32, %c0_i32_0 : i32, i32
  }
  func.func @transform_7(%arg0: i32) -> (i32, i32) {
    %c0_i32 = arith.constant 0 : i32
    %c0_i32_0 = arith.constant 0 : i32
    %c0_i32_1 = arith.constant 0 : i32
    return %c0_i32, %c0_i32_0 : i32, i32
  }
  func.func @transform_8(%arg0: i32) -> (i32, i32, i32) {
    %c0_i32 = arith.constant 0 : i32
    %c0_i32_0 = arith.constant 0 : i32
    %c0_i32_1 = arith.constant 0 : i32
    return %arg0, %c0_i32, %c0_i32_0 : i32, i32, i32
  }
}

</mosaic_0001>

<bundles_post_ra>
// kernel: tpu_custom_call.1
= control target key start
LH: loop header
LB: loop body
LE: loop exit
PB: predicated region body
PF: predicated region fallthrough
CT: control target
= control target key end

     0   :  { %13 = vsyncpa [#allocation3], 0  ;;  %s3518_s0 = inlined_call_operand.vmem [shape: f32[4,256], index: 0, kind: input, shape index: {}]   ;;  %s3519_s1 = inlined_call_operand.vmem [shape: f32[256,2], index: 1, kind: input, shape index: {}]   ;;  %s3520_s2 = inlined_call_operand.vmem [shape: f32[2,4,256], index: 2, kind: input, shape index: {}]   ;;  %s3521_s3 = inlined_call_operand.vmem [shape: f32[1,256], index: 3, kind: input, shape index: {}]   ;;  %s3522_s4 = inlined_call_operand.vmem [shape: f32[4,4], index: 4, kind: input, shape index: {}]   ;;  %s3523_s5 = inlined_call_operand.vmem [shape: f32[4,1], index: 5, kind: input, shape index: {}]   ;;  %s3524_s6 = inlined_call_operand.vmem [shape: f32[128,2], index: 6, kind: input, shape index: {}]   ;;  %s3525_s7 = inlined_call_operand.vmem [shape: f32[4,1], index: 7, kind: input, shape index: {}]   ;;  %s3526_s8 = inlined_call_operand.hbm [shape: f32[2,4,256], index: 8, kind: output, shape index: {}]  }
   0x1   :  { %15 = vsyncpa [#allocation3 + $0x1], 0  ;;  %s2431_s27 = smov 0   ;;  %s2433_s28 = smov 0  }
   0x2   :  { %s2435_s29 = smov 0   ;;  %s2437_s30 = smov 0  }
   0x3 LB: > { %s2452_s9 = sadd.s32 4294967295, %s2378_s30   ;;  %s1978_s10 = sadd.s32 4294967294, %s2378_s30   ;;  %s2378_s30 = sphi %s2437_s30, %s3577_s30   ;;  %s2374_s29 = sphi %s2435_s29, %s3576_s29   ;;  %s2370_s28 = sphi %s2433_s28, %s3575_s28   ;;  %s2366_s27 = sphi %s2431_s27, %s3574_s27  }
   0x4   : > { %s2456_s11 = sadd.s32 1, %s2378_s30   ;;  %s201_s12 = sadd.s32 1, %s2374_s29 }
   0x5   : > { %s198_s13 = ssub.s32 %s2378_s30, %s2456_s11  ;;  %p211_p0 = scmp.ne.s32.totalorder %s2374_s29, %s2370_s28 }
   0x6   : > { %p199_p1 = scmp.eq.s32.totalorder %s198_s13, 0  ;;  %p212_p2 = scmp.eq.s32.totalorder %s2452_s9, 1 }
   0x7   : > { %p217_p3 = scmp.ne.s32.totalorder %s2370_s28, %s2366_s27  ;;  %p218_p4 = scmp.eq.s32.totalorder %s1978_s10, 1 }
   0x8   : > { %s2467_s14 = scalar_select %p199_p1, %s2374_s29, %s201_s12  }
   0x9   : > { %p2469_p5 = por %p212_p2, %p211_p0  ;;  %p2473_p6 = por %p218_p4, %p217_p3 }
   0xa   : > { %p1981_p7 = scmp.ge.s32.totalorder %s2378_s30, 1  ;;  %p265_p8 = scmp.lt.s32.totalorder %s2378_s30, 3 }
   0xc   : > { %p266_p9 = pnand %p1981_p7, %p265_p8 }
   0xe   : > { %269 = sbr.rel (%p266_p9) target bundleno = 1275 (0x4fb), region = 52 }
  0x13   : > { %p299_p10 = scmp.lt.s32.totalorder %s2452_s9, 1  ;;  %v2380_v0 = vmov 0.0   ;;  %v340_v1 = vld [vmem:[%s3523_s5] sm:$0xf]  ;;  %v2381_v2 = vmov 0   ;;  %vm369_vm0 = vcmask 1043456   ;;  %v449_v11 = vlaneseq }
  0x14   : > { %438 = vmatprep.mubr.f32.mxu0 %v2380_v0  ;;  %585 = vmatprep.mubr.f32.mxu1 %v2380_v0  ;;  %v339_v5 = vld [vmem:[%s3522_s4] sm:$0xf]  ;;  %vm365_vm1 = vcmask 31744   ;;  %s2382_s26 = smov 127   ;;  %s2383_s10 = smov 112   ;;  %vm514_vm4 = vcmask 1041408  }
  0x15   : > { %s300_s19 = scalar_select %p299_p10, %s2452_s9, 1  ;;  %2123 = vset.pattern.permute.xlu0 %v2381_v2  ;;  %2124 = vset.pattern.permute.xlu1 %v2381_v2  ;;  %v450_v12 = vand.u32 127, %v449_v11  ;;  %v341_v25 = vld [vmem:[%s3524_s6] sm:$0xff]  ;;  %vm465_vm5 = vcmask 15360   ;;  %v342_v29 = vld [vmem:[%s3524_s6 + $0x8] sm:$0xff]  ;;  %v343_v31 = vld [vmem:[%s3524_s6 + $0x10] sm:$0xff] }
  0x16   : > { %360 = vperm.xlu0 %2123, %v340_v1   ;;  %v304_v28 = vld [vmem:[%s3519_s1] sm:$0xff]  ;;  %v305_v30 = vld [vmem:[%s3519_s1 + $0x8] sm:$0xff]  ;;  %v306_v32 = vld [vmem:[%s3519_s1 + $0x10] sm:$0xff]  ;;  %s296_s24 = sand.u32 1, %s2370_s28   ;;  %s2046_s12 = sshll.u32 %s2452_s9, 7 }
  0x17   : > { %s2045_s20 = sshll.u32 %s300_s19, 3  ;;  %vm451_vm2 = vcmp.lt.s32.totalorder %v450_v12, 127  ;;  %vm460_vm3 = vcmp.lt.s32.totalorder %v450_v12, 112  ;;  %v344_v33 = vld [vmem:[%s3524_s6 + $0x18] sm:$0xff]  ;;  %v345_v35 = vld [vmem:[%s3524_s6 + $0x20] sm:$0xff]  ;;  %v346_v37 = vld [vmem:[%s3524_s6 + $0x28] sm:$0xff] }
  0x18   : > { %s303_s23 = scalar_lea.vmem %s3520_s2, %s2045_s20  ;;  %v307_v34 = vld [vmem:[%s3519_s1 + $0x18] sm:$0xff]  ;;  %v308_v36 = vld [vmem:[%s3519_s1 + $0x20] sm:$0xff]  ;;  %v309_v38 = vld [vmem:[%s3519_s1 + $0x28] sm:$0xff]  ;;  %s1982_s25 = sshll.u32 %s296_s24, 3 }
  0x19   : > { %v357_v3 = vld [vmem:[%s303_s23] sm:$0xff]  ;;  %v347_v39 = vld [vmem:[%s3524_s6 + $0x30] sm:$0xff]  ;;  %v348_v41 = vld [vmem:[%s3524_s6 + $0x38] sm:$0xff]  ;;  %s298_s13 = scalar_lea.vmem [#allocation2], %s1982_s25  ;;  %s1917_s20 = scalar_lea.hbm %s3526_s8, %s2046_s12 }
  0x1a   : > { %v364_v4 = vcombine.high %v357_v3, %v357_v3  ;;  %v310_v40 = vld [vmem:[%s3519_s1 + $0x30] sm:$0xff]  ;;  %v311_v42 = vld [vmem:[%s3519_s1 + $0x38] sm:$0xff]  ;;  %v349_v43 = vld [vmem:[%s3524_s6 + $0x40] sm:$0xff]  ;;  %s1919_s17 = sshll.u32 %s298_s13, 4  ;;  %s1905_s21 = scalar_lea.sflag [#allocation3], %s296_s24  ;;  %s1920_s17 = int_to_ptr.vmem [resolvable:$true] %s1919_s17 }
  0x1b   : > { %v312_v44 = vld [vmem:[%s3519_s1 + $0x40] sm:$0xff]  ;;  %v350_v45 = vld [vmem:[%s3524_s6 + $0x48] sm:$0xff]  ;;  %v351_v47 = vld [vmem:[%s3524_s6 + $0x50] sm:$0xff]  ;;  %s2318_s22 = scalar_lea.vmem %s1920_s17, 128  ;;  %s2385_s23 = smov [#allocation2]  }
  0x1c   : > { %1985 = vmatprep.subr.msk.mxu0 %vm369_vm0, %v364_v4  ;;  %v313_v46 = vld [vmem:[%s3519_s1 + $0x48] sm:$0xff]  ;;  %v314_v48 = vld [vmem:[%s3519_s1 + $0x50] sm:$0xff]  ;;  %v352_v49 = vld [vmem:[%s3524_s6 + $0x58] sm:$0xff]  ;;  %p2319_p11 = scmp.ne.s32.totalorder %s1920_s17, %s2318_s22  ;;  %s2322_s9 = sshll.u32 %s2385_s23, 4  ;;  %s2323_s9 = int_to_ptr.vmem [resolvable:$false] %s2322_s9 }
  0x1d   : > { %1986 = vmatpush1.msk.msra.mxu0 %vm369_vm0, %v357_v3  ;;  %v315_v50 = vld [vmem:[%s3519_s1 + $0x58] sm:$0xff]  ;;  %v353_v51 = vld [vmem:[%s3524_s6 + $0x60] sm:$0xff]  ;;  %v354_v53 = vld [vmem:[%s3524_s6 + $0x68] sm:$0xff]  ;;  %s2324_s25 = scalar_lea.vmem %s2323_s9, 256  ;;  %p2325_p0 = scmp.lt.s32.totalorder %s1920_s17, %s2323_s9 }
  0x1e   : > { %1987 = vmatmul.mubr.msk.f32.vlgmr.msra.gmra.mxu0 %vm365_vm1, %v339_v5  ;;  %v316_v52 = vld [vmem:[%s3519_s1 + $0x60] sm:$0xff]  ;;  %v317_v54 = vld [vmem:[%s3519_s1 + $0x68] sm:$0xff]  ;;  %v355_v55 = vld [vmem:[%s3524_s6 + $0x70] sm:$0xff]  ;;  %p2320_p12 = pnand %p2319_p11, %p2469_p5  ;;  %p2326_p1 = scmp.lt.s32.totalorder %s2324_s25, %s2318_s22 }
  0x1f   : > { %859 = vmatprep.mubr.f32.mxu0 %v2380_v0  ;;  %v318_v56 = vld [vmem:[%s3519_s1 + $0x70] sm:$0xff]  ;;  %v356_v57 = vld [vmem:[%s3524_s6 + $0x78] sm:$0xff]  ;;  %v320_v59 = vld [vmem:[%s3519_s1 + $0x80] sm:$0xff] }
  0x20   : > { %v319_v58 = vld [vmem:[%s3519_s1 + $0x78] sm:$0xff]  ;;  %v321_v60 = vld [vmem:[%s3519_s1 + $0x88] sm:$0xff]  ;;  %v322_v61 = vld [vmem:[%s3519_s1 + $0x90] sm:$0xff]  ;;  %p2321_p13 = pneg %p2320_p12  ;;  %p2327_p2 = por %p2326_p1, %p2325_p0 }
  0x21   : > { %v323_v62 = vld [vmem:[%s3519_s1 + $0x98] sm:$0xff]  ;;  %v324_v63 = vld [vmem:[%s3519_s1 + $0xa0] sm:$0xff]  ;;  %v325_v1 = vld [vmem:[%s3519_s1 + $0xa8] sm:$0xff] }
  0x22   : > { %v326_v2 = vld [vmem:[%s3519_s1 + $0xb0] sm:$0xff]  ;;  %v327_v3 = vld [vmem:[%s3519_s1 + $0xb8] sm:$0xff]  ;;  %v328_v4 = vld [vmem:[%s3519_s1 + $0xc0] sm:$0xff]  ;;  %p2328_p3 = pnand %p2327_p2, %p2321_p13 }
  0x23   : > { %v329_v5 = vld [vmem:[%s3519_s1 + $0xc8] sm:$0xff]  ;;  %v335_v12 = vld [vmem:[%s3519_s1 + $0xf8] sm:$0xff] }
  0x91   : > { %v361_v6 = vpop.permute.xlu0 %360 }
  0xde   : > { %v440_v7 = vpop.f32.mrf.mxu0 }
  0xdf   : > { %v441_v8 = vadd.f32 %v440_v7, %v361_v6  ;;  %v331_v7 = vld [vmem:[%s3519_s1 + $0xd8] sm:$0xff] }
  0xe0   : > { %v442_v9 = vpop.f32.mrf.mxu0 }
  0xe1   : > { %v443_v10 = vadd.f32 %v442_v9, %v361_v6  ;;  %445 = vrot.lane.b32.xlu0 %v441_v8, %s2382_s26  ;;  %v330_v6 = vld [vmem:[%s3519_s1 + $0xd0] sm:$0xff]  ;;  %v333_v9 = vld [vmem:[%s3519_s1 + $0xe8] sm:$0xff] }
  0xe3   : > { %447 = vrot.lane.b32.xlu1 %v443_v10, %s2382_s26 }
 0x153   : > { %v446_v13 = vpop.permute.xlu0 %445 }
 0x155   : > { %v448_v14 = vpop.permute.xlu1 %447 }
 0x156   : > { %v452_v15 = vsel %vm451_vm2, %v446_v13, %v448_v14  ;;  %v453_v16 = vsel %vm451_vm2, %v448_v14, %v446_v13 }
 0x157   : > { %v454_v17 = vmax.f32 %v441_v8, %v452_v15  ;;  %v455_v18 = vmax.f32 %v443_v10, %v453_v16  ;;  %v332_v8 = vld [vmem:[%s3519_s1 + $0xe0] sm:$0xff]  ;;  %v334_v10 = vld [vmem:[%s3519_s1 + $0xf0] sm:$0xff] }
 0x159   : > { %458 = vrot.lane.b32.xlu0 %v455_v18, %s2383_s10  ;;  %456 = vrot.lane.b32.xlu1 %v454_v17, %s2383_s10 }
 0x1cb   : > { %v459_v19 = vpop.permute.xlu0 %458  ;;  %v457_v20 = vpop.permute.xlu1 %456 }
 0x1cc   : > { %v461_v21 = vsel %vm460_vm3, %v457_v20, %v459_v19  ;;  %v462_v22 = vsel %vm460_vm3, %v459_v19, %v457_v20 }
 0x1cd   : > { %v463_v23 = vmax.f32 %v454_v17, %v461_v21  ;;  %v464_v24 = vmax.f32 %v455_v18, %v462_v22 }
 0x1cf   : > { %v693_v26 = vrot.slane %v463_v23, 2  ;;  %1988 = vmatprep.subr.msk.mxu1 %vm514_vm4, %v464_v24  ;;  %v694_v27 = vrot.slane %v464_v24, 2 }
 0x1d0   : > { %1989 = vmatpush1.msk.msra.mxu1 %vm514_vm4, %v463_v23 }
 0x1d1   : > { %1990 = vmatmul.mubr.msk.f32.vlgmr.msra.gmra.mxu1 %vm465_vm5, %v341_v25  ;;  %2006 = vmatprep.subr.msk.mxu0 %vm514_vm4, %v694_v27 }
 0x1d2   : > { %2007 = vmatpush1.msk.msra.mxu0 %vm514_vm4, %v693_v26  ;;  %591 = vmatprep.mubr.f32.mxu1 %v2380_v0 }
 0x1d3   : > { %2008 = vmatmul.mubr.msk.f32.vlgmr.msra.gmra.mxu0 %vm465_vm5, %v304_v28 }
 0x1d4   : > { %865 = vmatprep.mubr.f32.mxu0 %v2380_v0 }
 0x1d5   : > { %1991 = vmatmul.mubr.msk.f32.gmra.mxu1 %vm465_vm5, %v342_v29 }
 0x1d6   : > { %597 = vmatprep.mubr.f32.mxu1 %v2380_v0 }
 0x1d7   : > { %2009 = vmatmul.mubr.msk.f32.gmra.mxu0 %vm465_vm5, %v305_v30 }
 0x1d8   : > { %871 = vmatprep.mubr.f32.mxu0 %v2380_v0 }
 0x1d9   : > { %1992 = vmatmul.mubr.msk.f32.gmra.mxu1 %vm465_vm5, %v343_v31 }
 0x1da   : > { %603 = vmatprep.mubr.f32.mxu1 %v2380_v0 }
 0x1db   : > { %2010 = vmatmul.mubr.msk.f32.gmra.mxu0 %vm465_vm5, %v306_v32 }
 0x1dc   : > { %877 = vmatprep.mubr.f32.mxu0 %v2380_v0 }
 0x1dd   : > { %1993 = vmatmul.mubr.msk.f32.gmra.mxu1 %vm465_vm5, %v344_v33 }
 0x1de   : > { %609 = vmatprep.mubr.f32.mxu1 %v2380_v0 }
 0x1df   : > { %2011 = vmatmul.mubr.msk.f32.gmra.mxu0 %vm465_vm5, %v307_v34 }
 0x1e0   : > { %883 = vmatprep.mubr.f32.mxu0 %v2380_v0 }
 0x1e1   : > { %1994 = vmatmul.mubr.msk.f32.gmra.mxu1 %vm465_vm5, %v345_v35  ;;  %v2779_v35 = vshrl.u32 %v449_v11, 7 }
 0x1e2   : > { %615 = vmatprep.mubr.f32.mxu1 %v2380_v0 }
 0x1e3   : > { %2012 = vmatmul.mubr.msk.f32.gmra.mxu0 %vm465_vm5, %v308_v36  ;;  %3544 = vst [vmem:[#allocation5_spill] sm:$0xff] %v2779_v35 }
 0x1e4   : > { %889 = vmatprep.mubr.f32.mxu0 %v2380_v0 }
 0x1e5   : > { %1995 = vmatmul.mubr.msk.f32.gmra.mxu1 %vm465_vm5, %v346_v37 }
 0x1e6   : > { %621 = vmatprep.mubr.f32.mxu1 %v2380_v0 }
 0x1e7   : > { %2013 = vmatmul.mubr.msk.f32.gmra.mxu0 %vm465_vm5, %v309_v38 }
 0x1e8   : > { %895 = vmatprep.mubr.f32.mxu0 %v2380_v0 }
 0x1e9   : > { %1996 = vmatmul.mubr.msk.f32.gmra.mxu1 %vm465_vm5, %v347_v39 }
 0x1ea   : > { %627 = vmatprep.mubr.f32.mxu1 %v2380_v0 }
 0x1eb   : > { %2014 = vmatmul.mubr.msk.f32.gmra.mxu0 %vm465_vm5, %v310_v40  ;;  %v685_v40 = vsub.s32 0, %v2779_v35 }
 0x1ec   : > { %901 = vmatprep.mubr.f32.mxu0 %v2380_v0 }
 0x1ed   : > { %1997 = vmatmul.mubr.msk.f32.gmra.mxu1 %vm465_vm5, %v348_v41  ;;  %v689_v41 = vsub.s32 1, %v2779_v35 }
 0x1ee   : > { %633 = vmatprep.mubr.f32.mxu1 %v2380_v0 }
 0x1ef   : > { %2015 = vmatmul.mubr.msk.f32.gmra.mxu0 %vm465_vm5, %v311_v42  ;;  %v336_v42 = vld [vmem:[%s3521_s3] sm:$0x3] }
 0x1f0   : > { %907 = vmatprep.mubr.f32.mxu0 %v2380_v0 }
 0x1f1   : > { %1998 = vmatmul.mubr.msk.f32.gmra.mxu1 %vm465_vm5, %v349_v43 }
 0x1f2   : > { %639 = vmatprep.mubr.f32.mxu1 %v2380_v0 }
 0x1f3   : > { %2016 = vmatmul.mubr.msk.f32.gmra.mxu0 %vm465_vm5, %v312_v44 }
 0x1f4   : > { %913 = vmatprep.mubr.f32.mxu0 %v2380_v0 }
 0x1f5   : > { %1999 = vmatmul.mubr.msk.f32.gmra.mxu1 %vm465_vm5, %v350_v45 }
 0x1f6   : > { %645 = vmatprep.mubr.f32.mxu1 %v2380_v0 }
 0x1f7   : > { %2017 = vmatmul.mubr.msk.f32.gmra.mxu0 %vm465_vm5, %v313_v46  ;;  %v2800_v46 = vrot.slane %v336_v42, %v685_v40 }
 0x1f8   : > { %919 = vmatprep.mubr.f32.mxu0 %v2380_v0 }
 0x1f9   : > { %2000 = vmatmul.mubr.msk.f32.gmra.mxu1 %vm465_vm5, %v351_v47  ;;  %v2802_v47 = vrot.slane %v336_v42, %v689_v41 }
 0x1fa   : > { %651 = vmatprep.mubr.f32.mxu1 %v2380_v0 }
 0x1fb   : > { %2018 = vmatmul.mubr.msk.f32.gmra.mxu0 %vm465_vm5, %v314_v48 }
 0x1fc   : > { %925 = vmatprep.mubr.f32.mxu0 %v2380_v0 }
 0x1fd   : > { %2001 = vmatmul.mubr.msk.f32.gmra.mxu1 %vm465_vm5, %v352_v49 }
 0x1fe   : > { %657 = vmatprep.mubr.f32.mxu1 %v2380_v0 }
 0x1ff   : > { %2019 = vmatmul.mubr.msk.f32.gmra.mxu0 %vm465_vm5, %v315_v50 }
 0x200   : > { %931 = vmatprep.mubr.f32.mxu0 %v2380_v0 }
 0x201   : > { %2002 = vmatmul.mubr.msk.f32.gmra.mxu1 %vm465_vm5, %v353_v51 }
 0x202   : > { %663 = vmatprep.mubr.f32.mxu1 %v2380_v0 }
 0x203   : > { %2020 = vmatmul.mubr.msk.f32.gmra.mxu0 %vm465_vm5, %v316_v52 }
 0x204   : > { %937 = vmatprep.mubr.f32.mxu0 %v2380_v0 }
 0x205   : > { %2003 = vmatmul.mubr.msk.f32.gmra.mxu1 %vm465_vm5, %v354_v53 }
 0x206   : > { %669 = vmatprep.mubr.f32.mxu1 %v2380_v0 }
 0x207   : > { %2021 = vmatmul.mubr.msk.f32.gmra.mxu0 %vm465_vm5, %v317_v54 }
 0x208   : > { %943 = vmatprep.mubr.f32.mxu0 %v2380_v0 }
 0x209   : > { %2004 = vmatmul.mubr.msk.f32.gmra.mxu1 %vm465_vm5, %v355_v55 }
 0x20a   : > { %675 = vmatprep.mubr.f32.mxu1 %v2380_v0 }
 0x20b   : > { %2022 = vmatmul.mubr.msk.f32.gmra.mxu0 %vm465_vm5, %v318_v56 }
 0x20c   : > { %949 = vmatprep.mubr.f32.mxu0 %v2380_v0 }
 0x20d   : > { %2005 = vmatmul.mubr.msk.f32.gmra.mxu1 %vm465_vm5, %v356_v57 }
 0x20f   : > { %2023 = vmatmul.mubr.msk.f32.gmra.mxu0 %vm465_vm5, %v319_v58 }
 0x210   : > { %955 = vmatprep.mubr.f32.mxu0 %v2380_v0 }
 0x213   : > { %2024 = vmatmul.mubr.msk.f32.gmra.mxu0 %vm465_vm5, %v320_v59 }
 0x214   : > { %961 = vmatprep.mubr.f32.mxu0 %v2380_v0 }
 0x217   : > { %2025 = vmatmul.mubr.msk.f32.gmra.mxu0 %vm465_vm5, %v321_v60 }
 0x218   : > { %967 = vmatprep.mubr.f32.mxu0 %v2380_v0 }
 0x21b   : > { %2026 = vmatmul.mubr.msk.f32.gmra.mxu0 %vm465_vm5, %v322_v61 }
 0x21c   : > { %973 = vmatprep.mubr.f32.mxu0 %v2380_v0 }
 0x21f   : > { %2027 = vmatmul.mubr.msk.f32.gmra.mxu0 %vm465_vm5, %v323_v62 }
 0x220   : > { %979 = vmatprep.mubr.f32.mxu0 %v2380_v0 }
 0x223   : > { %2028 = vmatmul.mubr.msk.f32.gmra.mxu0 %vm465_vm5, %v324_v63 }
 0x224   : > { %985 = vmatprep.mubr.f32.mxu0 %v2380_v0 }
 0x227   : > { %2029 = vmatmul.mubr.msk.f32.gmra.mxu0 %vm465_vm5, %v325_v1 }
 0x228   : > { %991 = vmatprep.mubr.f32.mxu0 %v2380_v0 }
 0x22b   : > { %2030 = vmatmul.mubr.msk.f32.gmra.mxu0 %vm465_vm5, %v326_v2 }
 0x22c   : > { %997 = vmatprep.mubr.f32.mxu0 %v2380_v0 }
 0x22f   : > { %2031 = vmatmul.mubr.msk.f32.gmra.mxu0 %vm465_vm5, %v327_v3 }
 0x230   : > { %1003 = vmatprep.mubr.f32.mxu0 %v2380_v0 }
 0x233   : > { %2032 = vmatmul.mubr.msk.f32.gmra.mxu0 %vm465_vm5, %v328_v4 }
 0x234   : > { %1009 = vmatprep.mubr.f32.mxu0 %v2380_v0 }
 0x237   : > { %2033 = vmatmul.mubr.msk.f32.gmra.mxu0 %vm465_vm5, %v329_v5 }
 0x238   : > { %1015 = vmatprep.mubr.f32.mxu0 %v2380_v0 }
 0x23b   : > { %2034 = vmatmul.mubr.msk.f32.gmra.mxu0 %vm465_vm5, %v330_v6 }
 0x23c   : > { %1021 = vmatprep.mubr.f32.mxu0 %v2380_v0 }
 0x23f   : > { %2035 = vmatmul.mubr.msk.f32.gmra.mxu0 %vm465_vm5, %v331_v7 }
 0x240   : > { %1027 = vmatprep.mubr.f32.mxu0 %v2380_v0 }
 0x243   : > { %2036 = vmatmul.mubr.msk.f32.gmra.mxu0 %vm465_vm5, %v332_v8 }
 0x244   : > { %1033 = vmatprep.mubr.f32.mxu0 %v2380_v0 }
 0x247   : > { %2037 = vmatmul.mubr.msk.f32.gmra.mxu0 %vm465_vm5, %v333_v9 }
 0x248   : > { %1039 = vmatprep.mubr.f32.mxu0 %v2380_v0 }
 0x24b   : > { %2038 = vmatmul.mubr.msk.f32.gmra.mxu0 %vm465_vm5, %v334_v10 }
 0x24c   : > { %1045 = vmatprep.mubr.f32.mxu0 %v2380_v0 }
 0x24f   : > { %2039 = vmatmul.mubr.msk.f32.gmra.mxu0 %vm465_vm5, %v335_v12 }
 0x291   : > { %v2732_v13 = vpop.f32.mrf.mxu1 }
 0x293   : > { %v2734_v14 = vpop.f32.mrf.mxu1  ;;  %v2736_v15 = vpop.f32.mrf.mxu0 }
 0x295   : > { %v2738_v16 = vpop.f32.mrf.mxu1  ;;  %v2740_v17 = vpop.f32.mrf.mxu0 }
 0x297   : > { %v2742_v18 = vpop.f32.mrf.mxu1  ;;  %v2744_v19 = vpop.f32.mrf.mxu0 }
 0x299   : > { %v2746_v0 = vpop.f32.mrf.mxu1  ;;  %v2748_v20 = vpop.f32.mrf.mxu0 }
 0x29b   : > { %v2750_v21 = vpop.f32.mrf.mxu1  ;;  %v2752_v22 = vpop.f32.mrf.mxu0 }
 0x29d   : > { %v2754_v23 = vpop.f32.mrf.mxu1  ;;  %v2756_v24 = vpop.f32.mrf.mxu0 }
 0x29f   : > { %v2758_v25 = vpop.f32.mrf.mxu1  ;;  %v2760_v26 = vpop.f32.mrf.mxu0 }
 0x2a1   : > { %v2762_v27 = vpop.f32.mrf.mxu1  ;;  %v2764_v28 = vpop.f32.mrf.mxu0 }
 0x2a3   : > { %v2766_v29 = vpop.f32.mrf.mxu1  ;;  %v2768_v30 = vpop.f32.mrf.mxu0 }
 0x2a5   : > { %v2770_v31 = vpop.f32.mrf.mxu1  ;;  %v2772_v32 = vpop.f32.mrf.mxu0 }
 0x2a7   : > { %v2774_v33 = vpop.f32.mrf.mxu1  ;;  %v2776_v34 = vpop.f32.mrf.mxu0 }
 0x2a9   : > { %v2781_v36 = vpop.f32.mrf.mxu1  ;;  %v2783_v37 = vpop.f32.mrf.mxu0 }
 0x2ab   : > { %v2785_v38 = vpop.f32.mrf.mxu1  ;;  %v2787_v39 = vpop.f32.mrf.mxu0 }
 0x2ad   : > { %v2794_v43 = vpop.f32.mrf.mxu1  ;;  %v2796_v11 = vpop.f32.mrf.mxu0 }
 0x2af   : > { %v2798_v44 = vpop.f32.mrf.mxu1  ;;  %v903_v45 = vpop.f32.mrf.mxu0 }
 0x2b0   : > { %v2807_v50 = vadd.f32 %v903_v45, %v2800_v46 }
 0x2b1   : > { %v2804_v48 = vpop.f32.mrf.mxu1  ;;  %v905_v49 = vpop.f32.mrf.mxu0 }
 0x2b2   : > { %v2810_v51 = vadd.f32 %v905_v49, %v2802_v47 }
 0x2b3   : > { %v2812_v52 = vpop.f32.mrf.mxu1  ;;  %v909_v53 = vpop.f32.mrf.mxu0 }
 0x2b4   : > { %v1073_v54 = vmax.f32 %v2807_v50, %v2810_v51  ;;  %v2819_v57 = vadd.f32 %v909_v53, %v2800_v46 }
 0x2b5   : > { %v2816_v55 = vpop.f32.mrf.mxu1  ;;  %v911_v56 = vpop.f32.mrf.mxu0 }
 0x2b6   : > { %v2822_v58 = vadd.f32 %v911_v56, %v2802_v47  ;;  %1074 = vmax.xlane.f32.xlu1 %v1073_v54 }
 0x2b7   : > { %v2824_v59 = vpop.f32.mrf.mxu1  ;;  %v915_v60 = vpop.f32.mrf.mxu0 }
 0x2b8   : > { %v1076_v61 = vmax.f32 %v2819_v57, %v2822_v58  ;;  %v2831_v1 = vadd.f32 %v915_v60, %v2800_v46 }
 0x2b9   : > { %v2828_v62 = vpop.f32.mrf.mxu1  ;;  %v917_v63 = vpop.f32.mrf.mxu0 }
 0x2ba   : > { %v2834_v2 = vadd.f32 %v917_v63, %v2802_v47  ;;  %1077 = vmax.xlane.f32.xlu0 %v1076_v61 }
 0x2bb   : > { %v2836_v3 = vpop.f32.mrf.mxu1  ;;  %v921_v4 = vpop.f32.mrf.mxu0 }
 0x2bc   : > { %v1079_v5 = vmax.f32 %v2831_v1, %v2834_v2  ;;  %v2843_v8 = vadd.f32 %v921_v4, %v2800_v46 }
 0x2bd   : > { %v2840_v6 = vpop.f32.mrf.mxu1  ;;  %v923_v7 = vpop.f32.mrf.mxu0 }
 0x2be   : > { %3545 = vst [vmem:[#allocation6_spill] sm:$0xff] %v2843_v8  ;;  %v2846_v9 = vadd.f32 %v923_v7, %v2802_v47  ;;  %1080 = vmax.xlane.f32.xlu0 %v1079_v5 }
 0x2bf   : > { %v2848_v10 = vpop.f32.mrf.mxu1  ;;  %v927_v12 = vpop.f32.mrf.mxu0 }
 0x2c0   : > { %3546 = vst [vmem:[#allocation7_spill] sm:$0xff] %v2846_v9  ;;  %v1082_v40 = vmax.f32 %v2843_v8, %v2846_v9  ;;  %v2855_v45 = vadd.f32 %v927_v12, %v2800_v46 }
 0x2c1   : > { %v2852_v41 = vpop.f32.mrf.mxu1  ;;  %v929_v42 = vpop.f32.mrf.mxu0 }
 0x2c2   : > { %3547 = vst [vmem:[#allocation8_spill] sm:$0xff] %v2855_v45  ;;  %v2858_v49 = vadd.f32 %v929_v42, %v2802_v47  ;;  %1083 = vmax.xlane.f32.xlu1 %v1082_v40 }
 0x2c3   : > { %v661_v53 = vpop.f32.mrf.mxu1  ;;  %v933_v54 = vpop.f32.mrf.mxu0 }
 0x2c4   : > { %3548 = vst [vmem:[#allocation9_spill] sm:$0xff] %v2858_v49  ;;  %v1085_v56 = vmax.f32 %v2855_v45, %v2858_v49  ;;  %v2863_v63 = vadd.f32 %v933_v54, %v2800_v46 }
 0x2c5   : > { %v665_v60 = vpop.f32.mrf.mxu1  ;;  %v935_v61 = vpop.f32.mrf.mxu0 }
 0x2c6   : > { %3549 = vst [vmem:[#allocation10_spill] sm:$0xff] %v2863_v63  ;;  %v2866_v4 = vadd.f32 %v935_v61, %v2802_v47  ;;  %1086 = vmax.xlane.f32.xlu0 %v1085_v56 }
 0x2c7   : > { %v667_v5 = vpop.f32.mrf.mxu1  ;;  %v939_v7 = vpop.f32.mrf.mxu0 }
 0x2c8   : > { %3550 = vst [vmem:[#allocation11_spill] sm:$0xff] %v2866_v4  ;;  %v1088_v12 = vmax.f32 %v2863_v63, %v2866_v4  ;;  %v2871_v35 = vadd.f32 %v939_v7, %v2800_v46 }
 0x2c9   : > { %v671_v40 = vpop.f32.mrf.mxu1  ;;  %v941_v42 = vpop.f32.mrf.mxu0 }
 0x2ca   : > { %v2874_v49 = vadd.f32 %v941_v42, %v2802_v47  ;;  %1089 = vmax.xlane.f32.xlu1 %v1088_v12 }
 0x2cb   : > { %v673_v54 = vpop.f32.mrf.mxu1  ;;  %v945_v45 = vpop.f32.mrf.mxu0 }
 0x2cc   : > { %3551 = vst [vmem:[#allocation12_spill] sm:$0xff] %v2874_v49  ;;  %v1091_v61 = vmax.f32 %v2871_v35, %v2874_v49  ;;  %v2879_v8 = vadd.f32 %v945_v45, %v2800_v46 }
 0x2cd   : > { %v677_v56 = vpop.f32.mrf.mxu1  ;;  %v947_v9 = vpop.f32.mrf.mxu0 }
 0x2ce   : > { %v2882_v4 = vadd.f32 %v947_v9, %v2802_v47  ;;  %1092 = vmax.xlane.f32.xlu0 %v1091_v61 }
 0x2cf   : > { %v679_v7 = vpop.f32.mrf.mxu1  ;;  %v951_v63 = vpop.f32.mrf.mxu0 }
 0x2d0   : > { %3552 = vst [vmem:[#allocation13_spill] sm:$0xff] %v2882_v4  ;;  %1564 = vmatprep.subr.mxu0 %v679_v7  ;;  %2047 = vmatprep.subr.mxu1 %v679_v7  ;;  %v1094_v12 = vmax.f32 %v2879_v8, %v2882_v4  ;;  %v2887_v49 = vadd.f32 %v951_v63, %v2800_v46 }
 0x2d1   : > { %v953_v42 = vpop.f32.mrf.mxu0  ;;  %1565 = vmatpush1.xpose.msra.mxu0 %v677_v56  ;;  %2063 = vmatpush1.xpose.msra.mxu1 %v677_v56 }
 0x2d2   : > { %v2890_v45 = vadd.f32 %v953_v42, %v2802_v47  ;;  %1095 = vmax.xlane.f32.xlu1 %v1094_v12  ;;  %1566 = vmatprep.subr.mxu0 %v673_v54 }
 0x2d3   : > { %v957_v9 = vpop.f32.mrf.mxu0  ;;  %2048 = vmatprep.subr.mxu1 %v673_v54 }
 0x2d4   : > { %v1097_v61 = vmax.f32 %v2887_v49, %v2890_v45  ;;  %v2895_v4 = vadd.f32 %v957_v9, %v2800_v46 }
 0x2d5   : > { %v959_v7 = vpop.f32.mrf.mxu0  ;;  %1567 = vmatpush1.xpose.msra.mxu0 %v671_v40  ;;  %2064 = vmatpush1.xpose.msra.mxu1 %v671_v40 }
 0x2d6   : > { %v2898_v56 = vadd.f32 %v959_v7, %v2802_v47  ;;  %1098 = vmax.xlane.f32.xlu0 %v1097_v61  ;;  %1568 = vmatprep.subr.mxu0 %v667_v5 }
 0x2d7   : > { %v963_v63 = vpop.f32.mrf.mxu0  ;;  %2049 = vmatprep.subr.mxu1 %v667_v5 }
 0x2d8   : > { %v1100_v12 = vmax.f32 %v2895_v4, %v2898_v56  ;;  %v2903_v42 = vadd.f32 %v963_v63, %v2800_v46 }
 0x2d9   : > { %v965_v54 = vpop.f32.mrf.mxu0  ;;  %1569 = vmatpush1.xpose.msra.mxu0 %v665_v60  ;;  %2065 = vmatpush1.xpose.msra.mxu1 %v665_v60 }
 0x2da   : > { %v2906_v40 = vadd.f32 %v965_v54, %v2802_v47  ;;  %1101 = vmax.xlane.f32.xlu1 %v1100_v12  ;;  %1570 = vmatprep.subr.mxu0 %v661_v53 }
 0x2db   : > { %v969_v9 = vpop.f32.mrf.mxu0  ;;  %2050 = vmatprep.subr.mxu1 %v661_v53 }
 0x2dc   : > { %v1103_v61 = vmax.f32 %v2903_v42, %v2906_v40  ;;  %v2913_v60 = vadd.f32 %v969_v9, %v2800_v46 }
 0x2dd   : > { %v971_v5 = vpop.f32.mrf.mxu0  ;;  %1571 = vmatpush1.xpose.msra.mxu0 %v2852_v41  ;;  %2066 = vmatpush1.xpose.msra.mxu1 %v2852_v41 }
 0x2de   : > { %v2916_v7 = vadd.f32 %v971_v5, %v2802_v47  ;;  %1104 = vmax.xlane.f32.xlu0 %v1103_v61  ;;  %1572 = vmatprep.subr.mxu0 %v2848_v10 }
 0x2df   : > { %v975_v63 = vpop.f32.mrf.mxu0  ;;  %2051 = vmatprep.subr.mxu1 %v2848_v10  ;;  %v2934_v10 = vadd.f32 %v2740_v17, %v2802_v47 }
 0x2e0   : > { %v1106_v53 = vmax.f32 %v2913_v60, %v2916_v7  ;;  %v2925_v41 = vadd.f32 %v975_v63, %v2800_v46  ;;  %v2945_v63 = vadd.f32 %v2736_v15, %v2800_v46 }
 0x2e1   : > { %v977_v12 = vpop.f32.mrf.mxu0  ;;  %1573 = vmatpush1.xpose.msra.mxu0 %v2840_v6  ;;  %2067 = vmatpush1.xpose.msra.mxu1 %v2840_v6 }
 0x2e2   : > { %v2928_v54 = vadd.f32 %v977_v12, %v2802_v47  ;;  %1107 = vmax.xlane.f32.xlu1 %v1106_v53  ;;  %1574 = vmatprep.subr.mxu0 %v2836_v3  ;;  %v2954_v53 = vadd.f32 %v2748_v20, %v2802_v47 }
 0x2e3   : > { %v981_v9 = vpop.f32.mrf.mxu0  ;;  %2052 = vmatprep.subr.mxu1 %v2836_v3 }
 0x2e4   : > { %v2937_v61 = vadd.f32 %v981_v9, %v2800_v46  ;;  %v1109_v6 = vmax.f32 %v2925_v41, %v2928_v54 }
 0x2e5   : > { %v983_v5 = vpop.f32.mrf.mxu0  ;;  %1575 = vmatpush1.xpose.msra.mxu0 %v2828_v62  ;;  %2068 = vmatpush1.xpose.msra.mxu1 %v2828_v62  ;;  %v1052_v62 = vmax.f32 %v2945_v63, %v2934_v10 }
 0x2e6   : > { %v2948_v3 = vadd.f32 %v983_v5, %v2802_v47  ;;  %1110 = vmax.xlane.f32.xlu0 %v1109_v6  ;;  %1576 = vmatprep.subr.mxu0 %v2824_v59  ;;  %v2976_v5 = vadd.f32 %v2756_v24, %v2802_v47 }
 0x2e7   : > { %v987_v17 = vpop.f32.mrf.mxu0  ;;  %2053 = vmatprep.subr.mxu1 %v2824_v59  ;;  %v2967_v59 = vadd.f32 %v2744_v19, %v2800_v46 }
 0x2e8   : > { %v2957_v12 = vadd.f32 %v987_v17, %v2800_v46  ;;  %v1112_v15 = vmax.f32 %v2937_v61, %v2948_v3 }
 0x2e9   : > { %v989_v9 = vpop.f32.mrf.mxu0  ;;  %1577 = vmatpush1.xpose.msra.mxu0 %v2816_v55  ;;  %2069 = vmatpush1.xpose.msra.mxu1 %v2816_v55  ;;  %v1055_v17 = vmax.f32 %v2967_v59, %v2954_v53 }
 0x2ea   : > { %v2970_v20 = vadd.f32 %v989_v9, %v2802_v47  ;;  %1113 = vmax.xlane.f32.xlu1 %v1112_v15  ;;  %1053 = vmax.xlane.f32.xlu0 %v1052_v62  ;;  %v2998_v9 = vadd.f32 %v2764_v28, %v2802_v47 }
 0x2eb   : > { %v993_v6 = vpop.f32.mrf.mxu0  ;;  %1578 = vmatprep.subr.mxu0 %v2812_v52  ;;  %2054 = vmatprep.subr.mxu1 %v2812_v52  ;;  %v2989_v52 = vadd.f32 %v2752_v22, %v2800_v46 }
 0x2ec   : > { %v2979_v55 = vadd.f32 %v993_v6, %v2800_v46  ;;  %v1115_v19 = vmax.f32 %v2957_v12, %v2970_v20 }
 0x2ed   : > { %v995_v15 = vpop.f32.mrf.mxu0  ;;  %1579 = vmatpush1.xpose.msra.mxu0 %v2804_v48  ;;  %2070 = vmatpush1.xpose.msra.mxu1 %v2804_v48  ;;  %v1058_v6 = vmax.f32 %v2989_v52, %v2976_v5 }
 0x2ee   : > { %v2992_v24 = vadd.f32 %v995_v15, %v2802_v47  ;;  %1116 = vmax.xlane.f32.xlu1 %v1115_v19  ;;  %1056 = vmax.xlane.f32.xlu0 %v1055_v17  ;;  %v3020_v15 = vadd.f32 %v2772_v32, %v2802_v47 }
 0x2ef   : > { %v999_v62 = vpop.f32.mrf.mxu0  ;;  %1580 = vmatprep.subr.mxu0 %v2798_v44  ;;  %2055 = vmatprep.subr.mxu1 %v2798_v44  ;;  %v3011_v44 = vadd.f32 %v2760_v26, %v2800_v46 }
 0x2f0   : > { %v3001_v48 = vadd.f32 %v999_v62, %v2800_v46  ;;  %v1118_v22 = vmax.f32 %v2979_v55, %v2992_v24 }
 0x2f1   : > { %v1001_v19 = vpop.f32.mrf.mxu0  ;;  %1581 = vmatpush1.xpose.msra.mxu0 %v2794_v43  ;;  %2071 = vmatpush1.xpose.msra.mxu1 %v2794_v43  ;;  %v1061_v62 = vmax.f32 %v3011_v44, %v2998_v9 }
 0x2f2   : > { %v3014_v28 = vadd.f32 %v1001_v19, %v2802_v47  ;;  %1119 = vmax.xlane.f32.xlu1 %v1118_v22  ;;  %1059 = vmax.xlane.f32.xlu0 %v1058_v6  ;;  %v3042_v19 = vadd.f32 %v2783_v37, %v2802_v47 }
 0x2f3   : > { %v1005_v17 = vpop.f32.mrf.mxu0  ;;  %1582 = vmatprep.subr.mxu0 %v2785_v38  ;;  %2056 = vmatprep.subr.mxu1 %v2785_v38  ;;  %v3033_v38 = vadd.f32 %v2768_v30, %v2800_v46 }
 0x2f4   : > { %v3023_v43 = vadd.f32 %v1005_v17, %v2800_v46  ;;  %v1121_v26 = vmax.f32 %v3001_v48, %v3014_v28 }
 0x2f5   : > { %v1007_v22 = vpop.f32.mrf.mxu0  ;;  %1583 = vmatpush1.xpose.msra.mxu0 %v2781_v36  ;;  %2072 = vmatpush1.xpose.msra.mxu1 %v2781_v36  ;;  %v1064_v17 = vmax.f32 %v3033_v38, %v3020_v15 }
 0x2f6   : > { %v3036_v32 = vadd.f32 %v1007_v22, %v2802_v47  ;;  %1122 = vmax.xlane.f32.xlu1 %v1121_v26  ;;  %1062 = vmax.xlane.f32.xlu0 %v1061_v62  ;;  %v3064_v22 = vadd.f32 %v2796_v11, %v2802_v47 }
 0x2f7   : > { %v1011_v6 = vpop.f32.mrf.mxu0  ;;  %1584 = vmatprep.subr.mxu0 %v2774_v33  ;;  %2057 = vmatprep.subr.mxu1 %v2774_v33  ;;  %v3055_v33 = vadd.f32 %v2776_v34, %v2800_v46 }
 0x2f8   : > { %v3045_v36 = vadd.f32 %v1011_v6, %v2800_v46  ;;  %v1124_v30 = vmax.f32 %v3023_v43, %v3036_v32 }
 0x2f9   : > { %v1013_v26 = vpop.f32.mrf.mxu0  ;;  %1585 = vmatpush1.xpose.msra.mxu0 %v2770_v31  ;;  %2073 = vmatpush1.xpose.msra.mxu1 %v2770_v31  ;;  %v1067_v6 = vmax.f32 %v3055_v33, %v3042_v19 }
 0x2fa   : > { %v3058_v37 = vadd.f32 %v1013_v26, %v2802_v47  ;;  %1125 = vmax.xlane.f32.xlu1 %v1124_v30  ;;  %1065 = vmax.xlane.f32.xlu0 %v1064_v17 }
 0x2fb   : > { %1586 = vmatprep.subr.mxu0 %v2766_v29  ;;  %2058 = vmatprep.subr.mxu1 %v2766_v29  ;;  %v1017_v62 = vpop.f32.mrf.mxu0  ;;  %v3077_v29 = vadd.f32 %v2787_v39, %v2800_v46 }
 0x2fc   : > { %v3067_v31 = vadd.f32 %v1017_v62, %v2800_v46  ;;  %v1127_v34 = vmax.f32 %v3045_v36, %v3058_v37 }
 0x2fd   : > { %v1019_v30 = vpop.f32.mrf.mxu0  ;;  %1587 = vmatpush1.xpose.msra.mxu0 %v2762_v27  ;;  %2074 = vmatpush1.xpose.msra.mxu1 %v2762_v27  ;;  %v1070_v39 = vmax.f32 %v3077_v29, %v3064_v22 }
 0x2fe   : > { %v3080_v11 = vadd.f32 %v1019_v30, %v2802_v47  ;;  %1128 = vmax.xlane.f32.xlu1 %v1127_v34  ;;  %1068 = vmax.xlane.f32.xlu0 %v1067_v6 }
 0x2ff   : > { %1588 = vmatprep.subr.mxu0 %v2758_v25  ;;  %2059 = vmatprep.subr.mxu1 %v2758_v25  ;;  %v1023_v17 = vpop.f32.mrf.mxu0 }
 0x300   : > { %v3085_v26 = vadd.f32 %v1023_v17, %v2800_v46  ;;  %v1130_v27 = vmax.f32 %v3067_v31, %v3080_v11 }
 0x301   : > { %v1025_v62 = vpop.f32.mrf.mxu0  ;;  %1589 = vmatpush1.xpose.msra.mxu0 %v2754_v23  ;;  %2075 = vmatpush1.xpose.msra.mxu1 %v2754_v23 }
 0x302   : > { %v3094_v34 = vadd.f32 %v1025_v62, %v2802_v47  ;;  %1131 = vmax.xlane.f32.xlu1 %v1130_v27  ;;  %1071 = vmax.xlane.f32.xlu0 %v1070_v39 }
 0x303   : > { %1590 = vmatprep.subr.mxu0 %v2750_v21  ;;  %2060 = vmatprep.subr.mxu1 %v2750_v21  ;;  %v1029_v25 = vpop.f32.mrf.mxu0 }
 0x304   : > { %v3099_v6 = vadd.f32 %v1029_v25, %v2800_v46  ;;  %v1133_v30 = vmax.f32 %v3085_v26, %v3094_v34 }
 0x305   : > { %v1031_v17 = vpop.f32.mrf.mxu0  ;;  %1591 = vmatpush1.xpose.msra.mxu0 %v2746_v0  ;;  %2076 = vmatpush1.xpose.msra.mxu1 %v2746_v0 }
 0x306   : > { %v3106_v23 = vadd.f32 %v1031_v17, %v2802_v47  ;;  %1134 = vmax.xlane.f32.xlu1 %v1133_v30  ;;  %1592 = vmatprep.subr.mxu0 %v2742_v18 }
 0x307   : > { %2061 = vmatprep.subr.mxu1 %v2742_v18  ;;  %v1035_v21 = vpop.f32.mrf.mxu0 }
 0x308   : > { %v3111_v27 = vadd.f32 %v1035_v21, %v2800_v46  ;;  %v1136_v39 = vmax.f32 %v3099_v6, %v3106_v23 }
 0x309   : > { %v1037_v62 = vpop.f32.mrf.mxu0  ;;  %1593 = vmatpush1.xpose.msra.mxu0 %v2738_v16  ;;  %2077 = vmatpush1.xpose.msra.mxu1 %v2738_v16 }
 0x30a   : > { %3553 = vst [vmem:[#allocation14_spill] sm:$0xff] %v3111_v27  ;;  %v3118_v0 = vadd.f32 %v1037_v62, %v2802_v47  ;;  %1137 = vmax.xlane.f32.xlu0 %v1136_v39  ;;  %1594 = vmatprep.subr.mxu0 %v2734_v14 }
 0x30b   : > { %2062 = vmatprep.subr.mxu1 %v2734_v14  ;;  %v1041_v18 = vpop.f32.mrf.mxu0 }
 0x30c   : > { %3554 = vst [vmem:[#allocation15_spill] sm:$0xff] %v3118_v0  ;;  %v3123_v25 = vadd.f32 %v1041_v18, %v2800_v46  ;;  %v1139_v30 = vmax.f32 %v3111_v27, %v3118_v0 }
 0x30d   : > { %v1043_v17 = vpop.f32.mrf.mxu0  ;;  %1595 = vmatpush1.xpose.msra.mxu0 %v2732_v13  ;;  %2078 = vmatpush1.xpose.msra.mxu1 %v2732_v13  ;;  %v338_v13 = vld [vmem:[%s3525_s7] sm:$0xf] }
 0x30e   : > { %3555 = vst [vmem:[#allocation16_spill] sm:$0xff] %v3123_v25  ;;  %v3130_v16 = vadd.f32 %v1043_v17, %v2802_v47  ;;  %1140 = vmax.xlane.f32.xlu1 %v1139_v30 }
 0x30f   : > { %v1047_v21 = vpop.f32.mrf.mxu0 }
 0x310   : > { %3556 = vst [vmem:[#allocation17_spill] sm:$0xff] %v3130_v16  ;;  %v3133_v39 = vadd.f32 %v1047_v21, %v2800_v46  ;;  %v1142_v14 = vmax.f32 %v3123_v25, %v3130_v16 }
 0x311   : > { %v1049_v62 = vpop.f32.mrf.mxu0 }
 0x312   : > { %3557 = vst [vmem:[#allocation18_spill] sm:$0xff] %v3133_v39  ;;  %v3138_v18 = vadd.f32 %v1049_v62, %v2802_v47  ;;  %1143 = vmax.xlane.f32.xlu0 %v1142_v14 }
 0x314   : > { %3558 = vst [vmem:[#allocation19_spill] sm:$0xff] %v3138_v18  ;;  %v1145_v0 = vmax.f32 %v3133_v39, %v3138_v18 }
 0x316   : > { %1146 = vmax.xlane.f32.xlu1 %v1145_v0 }
 0x327   : > { %1892 = vperm.xlu1 %2124, %v338_v13  }
 0x33f   : > { %v1075_v30 = vpop.xlane.xlu1 %1074 }
 0x340   : > { %v1162_v46 = vsub.f32 %v2807_v50, %v1075_v30  ;;  %v1163_v17 = vsub.f32 %v2810_v51, %v1075_v30 }
 0x342   : > { %v1240_v21 = vmul.f32 1.442695, %v1162_v46  ;;  %v1242_v16 = vmul.f32 1.442695, %v1163_v17  ;;  %v3559_v46 = vld [vmem:[#allocation6_spill] sm:$0xff] }
 0x343   : > { %v1078_v25 = vpop.xlane.xlu0 %1077 }
 0x344   : > { %2126 = vpow2.f32 %v1240_v21  ;;  %v1164_v47 = vsub.f32 %v2819_v57, %v1078_v25  ;;  %v1165_v14 = vsub.f32 %v2822_v58, %v1078_v25  ;;  %v3560_v21 = vld [vmem:[#allocation7_spill] sm:$0xff] }
 0x345   : > { %2128 = vpow2.f32 %v1242_v16 }
 0x346   : > { %v1244_v0 = vmul.f32 1.442695, %v1164_v47  ;;  %v1246_v62 = vmul.f32 1.442695, %v1165_v14  ;;  %v3561_v47 = vld [vmem:[#allocation8_spill] sm:$0xff] }
 0x347   : > { %v1081_v18 = vpop.xlane.xlu0 %1080 }
 0x348   : > { %2130 = vpow2.f32 %v1244_v0  ;;  %v1166_v13 = vsub.f32 %v2831_v1, %v1081_v18  ;;  %v1167_v39 = vsub.f32 %v2834_v2, %v1081_v18  ;;  %v3562_v0 = vld [vmem:[#allocation9_spill] sm:$0xff] }
 0x349   : > { %2132 = vpow2.f32 %v1246_v62 }
 0x34a   : > { %v1248_v50 = vmul.f32 1.442695, %v1166_v13  ;;  %v1250_v51 = vmul.f32 1.442695, %v1167_v39 }
 0x34b   : > { %v1084_v30 = vpop.xlane.xlu1 %1083 }
 0x34c   : > { %2134 = vpow2.f32 %v1248_v50  ;;  %v1168_v17 = vsub.f32 %v3559_v46, %v1084_v30  ;;  %v1169_v57 = vsub.f32 %v3560_v21, %v1084_v30  ;;  %v3563_v50 = vld [vmem:[#allocation10_spill] sm:$0xff]  ;;  %v3564_v30 = vld [vmem:[#allocation11_spill] sm:$0xff] }
 0x34d   : > { %2136 = vpow2.f32 %v1250_v51 }
 0x34e   : > { %v1252_v58 = vmul.f32 1.442695, %v1168_v17  ;;  %v1254_v25 = vmul.f32 1.442695, %v1169_v57 }
 0x34f   : > { %v1087_v16 = vpop.xlane.xlu0 %1086 }
 0x350   : > { %2138 = vpow2.f32 %v1252_v58  ;;  %v1170_v14 = vsub.f32 %v3561_v47, %v1087_v16  ;;  %v1171_v1 = vsub.f32 %v3562_v0, %v1087_v16 }
 0x351   : > { %v2127_v27 = vpop.eup %2126  ;;  %2140 = vpow2.f32 %v1254_v25 }
 0x352   : > { %v2129_v2 = vpop.eup %2128  ;;  %v1256_v18 = vmul.f32 1.442695, %v1170_v14  ;;  %v1258_v39 = vmul.f32 1.442695, %v1171_v1  ;;  %v3565_v14 = vld [vmem:[#allocation12_spill] sm:$0xff] }
 0x353   : > { %1663 = vmatprep.mubr.f32.mxu1 %v2129_v2  ;;  %v1090_v62 = vpop.xlane.xlu1 %1089  ;;  %v3155_v13 = vadd.f32 %v2129_v2, %v2127_v27 }
 0x354   : > { %2142 = vpow2.f32 %v1256_v18  ;;  %v1172_v51 = vsub.f32 %v3563_v50, %v1090_v62  ;;  %v1173_v46 = vsub.f32 %v3564_v30, %v1090_v62  ;;  %1664 = vmatmul.mubr.f32.vlgmr.msra.gmra.mxu1 %v2127_v27 }
 0x355   : > { %v2131_v17 = vpop.eup %2130  ;;  %2144 = vpow2.f32 %v1258_v39 }
 0x356   : > { %v2133_v21 = vpop.eup %2132  ;;  %v1260_v57 = vmul.f32 1.442695, %v1172_v51  ;;  %v1262_v58 = vmul.f32 1.442695, %v1173_v46  ;;  %v3566_v51 = vld [vmem:[#allocation13_spill] sm:$0xff] }
 0x357   : > { %1668 = vmatprep.mubr.f32.mxu1 %v2133_v21  ;;  %v1093_v25 = vpop.xlane.xlu0 %1092  ;;  %v3159_v16 = vadd.f32 %v2133_v21, %v2131_v17 }
 0x358   : > { %2146 = vpow2.f32 %v1260_v57  ;;  %v1174_v47 = vsub.f32 %v2871_v35, %v1093_v25  ;;  %v1175_v0 = vsub.f32 %v3565_v14, %v1093_v25  ;;  %1669 = vmatmul.mubr.f32.gmra.mxu1 %v2131_v17 }
 0x359   : > { %v2135_v1 = vpop.eup %2134  ;;  %2148 = vpow2.f32 %v1262_v58 }
 0x35a   : > { %v2137_v2 = vpop.eup %2136  ;;  %v1264_v18 = vmul.f32 1.442695, %v1174_v47  ;;  %v1266_v27 = vmul.f32 1.442695, %v1175_v0 }
 0x35b   : > { %1673 = vmatprep.mubr.f32.mxu1 %v2137_v2  ;;  %v1096_v39 = vpop.xlane.xlu1 %1095  ;;  %v3163_v62 = vadd.f32 %v2137_v2, %v2135_v1 }
 0x35c   : > { %2150 = vpow2.f32 %v1264_v18  ;;  %v1176_v50 = vsub.f32 %v2879_v8, %v1096_v39  ;;  %v1177_v30 = vsub.f32 %v3566_v51, %v1096_v39  ;;  %1674 = vmatmul.mubr.f32.gmra.mxu1 %v2135_v1 }
 0x35d   : > { %v2139_v46 = vpop.eup %2138  ;;  %2152 = vpow2.f32 %v1266_v27 }
 0x35e   : > { %v2141_v35 = vpop.eup %2140  ;;  %v1268_v21 = vmul.f32 1.442695, %v1176_v50  ;;  %v1270_v17 = vmul.f32 1.442695, %v1177_v30 }
 0x35f   : > { %1678 = vmatprep.mubr.f32.mxu1 %v2141_v35  ;;  %v1099_v57 = vpop.xlane.xlu0 %1098  ;;  %v3167_v58 = vadd.f32 %v2141_v35, %v2139_v46 }
 0x360   : > { %2154 = vpow2.f32 %v1268_v21  ;;  %v1178_v25 = vsub.f32 %v2887_v49, %v1099_v57  ;;  %v1179_v47 = vsub.f32 %v2890_v45, %v1099_v57  ;;  %1679 = vmatmul.mubr.f32.gmra.mxu1 %v2139_v46 }
 0x361   : > { %v2143_v14 = vpop.eup %2142  ;;  %2156 = vpow2.f32 %v1270_v17 }
 0x362   : > { %v2145_v8 = vpop.eup %2144  ;;  %v1272_v0 = vmul.f32 1.442695, %v1178_v25  ;;  %v1274_v1 = vmul.f32 1.442695, %v1179_v47 }
 0x363   : > { %1683 = vmatprep.mubr.f32.mxu1 %v2145_v8  ;;  %v1102_v2 = vpop.xlane.xlu1 %1101  ;;  %v3171_v18 = vadd.f32 %v2145_v8, %v2143_v14 }
 0x364   : > { %2158 = vpow2.f32 %v1272_v0  ;;  %v1180_v27 = vsub.f32 %v2895_v4, %v1102_v2  ;;  %v1181_v39 = vsub.f32 %v2898_v56, %v1102_v2  ;;  %1684 = vmatmul.mubr.f32.gmra.mxu1 %v2143_v14 }
 0x365   : > { %v2147_v50 = vpop.eup %2146  ;;  %2160 = vpow2.f32 %v1274_v1 }
 0x366   : > { %v2149_v49 = vpop.eup %2148  ;;  %v1276_v45 = vmul.f32 1.442695, %v1180_v27  ;;  %v1278_v51 = vmul.f32 1.442695, %v1181_v39 }
 0x367   : > { %1688 = vmatprep.mubr.f32.mxu1 %v2149_v49  ;;  %v1105_v30 = vpop.xlane.xlu0 %1104  ;;  %v3175_v46 = vadd.f32 %v2149_v49, %v2147_v50 }
 0x368   : > { %2162 = vpow2.f32 %v1276_v45  ;;  %v1182_v35 = vsub.f32 %v2903_v42, %v1105_v30  ;;  %v1183_v21 = vsub.f32 %v2906_v40, %v1105_v30  ;;  %1689 = vmatmul.mubr.f32.gmra.mxu1 %v2147_v50 }
 0x369   : > { %v2151_v17 = vpop.eup %2150  ;;  %2164 = vpow2.f32 %v1278_v51 }
 0x36a   : > { %v2153_v4 = vpop.eup %2152  ;;  %v1280_v56 = vmul.f32 1.442695, %v1182_v35  ;;  %v1282_v57 = vmul.f32 1.442695, %v1183_v21 }
 0x36b   : > { %1693 = vmatprep.mubr.f32.mxu1 %v2153_v4  ;;  %v1108_v25 = vpop.xlane.xlu1 %1107  ;;  %v3179_v47 = vadd.f32 %v2153_v4, %v2151_v17 }
 0x36c   : > { %2166 = vpow2.f32 %v1280_v56  ;;  %v1184_v14 = vsub.f32 %v2913_v60, %v1108_v25  ;;  %v1185_v8 = vsub.f32 %v2916_v7, %v1108_v25  ;;  %1694 = vmatmul.mubr.f32.gmra.mxu1 %v2151_v17 }
 0x36d   : > { %v2155_v0 = vpop.eup %2154  ;;  %2168 = vpow2.f32 %v1282_v57 }
 0x36e   : > { %v2157_v42 = vpop.eup %2156  ;;  %v1284_v40 = vmul.f32 1.442695, %v1184_v14  ;;  %v1286_v1 = vmul.f32 1.442695, %v1185_v8 }
 0x36f   : > { %1698 = vmatprep.mubr.f32.mxu1 %v2157_v42  ;;  %v1111_v2 = vpop.xlane.xlu0 %1110  ;;  %v3183_v27 = vadd.f32 %v2157_v42, %v2155_v0 }
 0x370   : > { %2170 = vpow2.f32 %v1284_v40  ;;  %v1186_v39 = vsub.f32 %v2925_v41, %v1111_v2  ;;  %v1187_v50 = vsub.f32 %v2928_v54, %v1111_v2  ;;  %1699 = vmatmul.mubr.f32.gmra.mxu1 %v2155_v0 }
 0x371   : > { %v2159_v49 = vpop.eup %2158  ;;  %2172 = vpow2.f32 %v1286_v1 }
 0x372   : > { %v2161_v60 = vpop.eup %2160  ;;  %v1288_v7 = vmul.f32 1.442695, %v1186_v39  ;;  %v1290_v45 = vmul.f32 1.442695, %v1187_v50 }
 0x373   : > { %1703 = vmatprep.mubr.f32.mxu1 %v2161_v60  ;;  %v1114_v51 = vpop.xlane.xlu1 %1113  ;;  %v1054_v30 = vpop.xlane.xlu0 %1053  ;;  %v3187_v35 = vadd.f32 %v2161_v60, %v2159_v49 }
 0x374   : > { %2174 = vpow2.f32 %v1288_v7  ;;  %v1188_v21 = vsub.f32 %v2937_v61, %v1114_v51  ;;  %v1189_v17 = vsub.f32 %v2948_v3, %v1114_v51  ;;  %v1148_v41 = vsub.f32 %v2945_v63, %v1054_v30  ;;  %1704 = vmatmul.mubr.f32.gmra.mxu1 %v2159_v49 }
 0x375   : > { %v2163_v54 = vpop.eup %2162  ;;  %2176 = vpow2.f32 %v1290_v45  ;;  %v1149_v4 = vsub.f32 %v2934_v10, %v1054_v30 }
 0x376   : > { %v2165_v56 = vpop.eup %2164  ;;  %v1292_v57 = vmul.f32 1.442695, %v1188_v21  ;;  %v1294_v25 = vmul.f32 1.442695, %v1189_v17  ;;  %v1212_v14 = vmul.f32 1.442695, %v1148_v41 }
 0x377   : > { %v1214_v8 = vmul.f32 1.442695, %v1149_v4  ;;  %1708 = vmatprep.mubr.f32.mxu1 %v2165_v56  ;;  %v1117_v0 = vpop.xlane.xlu1 %1116  ;;  %v1057_v42 = vpop.xlane.xlu0 %1056  ;;  %v3193_v40 = vadd.f32 %v2165_v56, %v2163_v54 }
 0x378   : > { %2178 = vpow2.f32 %v1292_v57  ;;  %v1190_v61 = vsub.f32 %v2957_v12, %v1117_v0  ;;  %v1191_v63 = vsub.f32 %v2970_v20, %v1117_v0  ;;  %v1150_v3 = vsub.f32 %v2967_v59, %v1057_v42  ;;  %1709 = vmatmul.mubr.f32.gmra.mxu1 %v2163_v54 }
 0x379   : > { %v3198_v1 = vpop.eup %2166  ;;  %2180 = vpow2.f32 %v1294_v25  ;;  %v1151_v10 = vsub.f32 %v2954_v53, %v1057_v42 }
 0x37a   : > { %v3201_v2 = vpop.eup %2168  ;;  %2182 = vpow2.f32 %v1212_v14  ;;  %v1296_v39 = vmul.f32 1.442695, %v1190_v61  ;;  %v1298_v50 = vmul.f32 1.442695, %v1191_v63  ;;  %v1216_v49 = vmul.f32 1.442695, %v1150_v3 }
 0x37b   : > { %2184 = vpow2.f32 %v1214_v8  ;;  %v1218_v60 = vmul.f32 1.442695, %v1151_v10  ;;  %1713 = vmatprep.mubr.f32.mxu1 %v3201_v2  ;;  %v1120_v12 = vpop.xlane.xlu1 %1119  ;;  %v1060_v20 = vpop.xlane.xlu0 %1059 }
 0x37c   : > { %2186 = vpow2.f32 %v1296_v39  ;;  %v1192_v59 = vsub.f32 %v2979_v55, %v1120_v12  ;;  %v1193_v7 = vsub.f32 %v2992_v24, %v1120_v12  ;;  %v1152_v45 = vsub.f32 %v2989_v52, %v1060_v20  ;;  %1714 = vmatmul.mubr.f32.gmra.mxu1 %v3198_v1 }
 0x37d   : > { %v2171_v53 = vpop.eup %2170  ;;  %2188 = vpow2.f32 %v1298_v50  ;;  %v1153_v51 = vsub.f32 %v2976_v5, %v1060_v20 }
 0x37e   : > { %v2173_v30 = vpop.eup %2172  ;;  %2190 = vpow2.f32 %v1216_v49  ;;  %v1300_v21 = vmul.f32 1.442695, %v1192_v59  ;;  %v1302_v17 = vmul.f32 1.442695, %v1193_v7  ;;  %v1220_v41 = vmul.f32 1.442695, %v1152_v45 }
 0x37f   : > { %2192 = vpow2.f32 %v1218_v60  ;;  %v1222_v54 = vmul.f32 1.442695, %v1153_v51  ;;  %1718 = vmatprep.mubr.f32.mxu1 %v2173_v30  ;;  %v1123_v4 = vpop.xlane.xlu1 %1122  ;;  %v1063_v55 = vpop.xlane.xlu0 %1062  ;;  %v3209_v56 = vadd.f32 %v2173_v30, %v2171_v53 }
 0x380   : > { %2194 = vpow2.f32 %v1300_v21  ;;  %v1194_v52 = vsub.f32 %v3001_v48, %v1123_v4  ;;  %v1195_v24 = vsub.f32 %v3014_v28, %v1123_v4  ;;  %v1154_v57 = vsub.f32 %v3011_v44, %v1063_v55  ;;  %1719 = vmatmul.mubr.f32.gmra.mxu1 %v2171_v53 }
 0x381   : > { %v3214_v5 = vpop.eup %2174  ;;  %2196 = vpow2.f32 %v1302_v17  ;;  %v1155_v25 = vsub.f32 %v2998_v9, %v1063_v55 }
 0x382   : > { %v3217_v14 = vpop.eup %2176  ;;  %2198 = vpow2.f32 %v1220_v41  ;;  %v1304_v8 = vmul.f32 1.442695, %v1194_v52  ;;  %v1306_v0 = vmul.f32 1.442695, %v1195_v24  ;;  %v1224_v42 = vmul.f32 1.442695, %v1154_v57 }
 0x383   : > { %2200 = vpow2.f32 %v1222_v54  ;;  %v1226_v61 = vmul.f32 1.442695, %v1155_v25  ;;  %1723 = vmatprep.mubr.f32.mxu1 %v3217_v14  ;;  %v1126_v48 = vpop.xlane.xlu1 %1125  ;;  %v1066_v28 = vpop.xlane.xlu0 %1065 }
 0x384   : > { %2202 = vpow2.f32 %v1304_v8  ;;  %v1196_v44 = vsub.f32 %v3023_v43, %v1126_v48  ;;  %v1197_v63 = vsub.f32 %v3036_v32, %v1126_v48  ;;  %v1156_v3 = vsub.f32 %v3033_v38, %v1066_v28  ;;  %1724 = vmatmul.mubr.f32.gmra.mxu1 %v3214_v5 }
 0x385   : > { %v3224_v9 = vpop.eup %2178  ;;  %2204 = vpow2.f32 %v1306_v0  ;;  %v1157_v10 = vsub.f32 %v3020_v15, %v1066_v28 }
 0x386   : > { %v3227_v39 = vpop.eup %2180  ;;  %2206 = vpow2.f32 %v1224_v42  ;;  %v1308_v50 = vmul.f32 1.442695, %v1196_v44  ;;  %v1310_v49 = vmul.f32 1.442695, %v1197_v63  ;;  %v1228_v60 = vmul.f32 1.442695, %v1156_v3 }
 0x387   : > { %v2183_v12 = vpop.eup %2182  ;;  %2208 = vpow2.f32 %v1226_v61  ;;  %v1230_v43 = vmul.f32 1.442695, %v1157_v10  ;;  %1728 = vmatprep.mubr.f32.mxu1 %v3227_v39  ;;  %v1129_v32 = vpop.xlane.xlu1 %1128 }
 0x388   : > { %v1069_v38 = vpop.xlane.xlu0 %1068  ;;  %v2185_v20 = vpop.eup %2184  ;;  %2210 = vpow2.f32 %v1308_v50  ;;  %v1198_v59 = vsub.f32 %v3045_v36, %v1129_v32  ;;  %v1199_v7 = vsub.f32 %v3058_v37, %v1129_v32  ;;  %1729 = vmatmul.mubr.f32.gmra.mxu1 %v3224_v9 }
 0x389   : > { %v1158_v15 = vsub.f32 %v3055_v33, %v1069_v38  ;;  %v3234_v45 = vpop.eup %2186  ;;  %2212 = vpow2.f32 %v1310_v49  ;;  %1628 = vmatprep.mubr.f32.mxu0 %v2185_v20  ;;  %v1159_v53 = vsub.f32 %v3042_v19, %v1069_v38  ;;  %v1340_v51 = vadd.f32 %v2185_v20, %v2183_v12 }
 0x38a   : > { %v3237_v30 = vpop.eup %2188  ;;  %2214 = vpow2.f32 %v1228_v60  ;;  %v1312_v21 = vmul.f32 1.442695, %v1198_v59  ;;  %v1314_v17 = vmul.f32 1.442695, %v1199_v7  ;;  %1629 = vmatmul.mubr.f32.vlgmr.msra.gmra.mxu0 %v2183_v12 }
 0x38b   : > { %v1232_v41 = vmul.f32 1.442695, %v1158_v15  ;;  %v2191_v36 = vpop.eup %2190  ;;  %2216 = vpow2.f32 %v1230_v43  ;;  %v1234_v37 = vmul.f32 1.442695, %v1159_v53  ;;  %1341 = vadd.xlane.f32.xlu0 %v1340_v51  ;;  %1733 = vmatprep.mubr.f32.mxu1 %v3237_v30  ;;  %v1132_v33 = vpop.xlane.xlu1 %1131  ;;  %v3568_v51 = vld [vmem:[#allocation15_spill] sm:$0xff] }
 0x38c   : > { %v1072_v54 = vpop.xlane.xlu0 %1071  ;;  %v2193_v4 = vpop.eup %2192  ;;  %2218 = vpow2.f32 %v1312_v21  ;;  %v1200_v19 = vsub.f32 %v3067_v31, %v1132_v33  ;;  %v1201_v55 = vsub.f32 %v3080_v11, %v1132_v33  ;;  %1734 = vmatmul.mubr.f32.gmra.mxu1 %v3234_v45 }
 0x38d   : > { %v1160_v52 = vsub.f32 %v3077_v29, %v1072_v54  ;;  %v3244_v24 = vpop.eup %2194  ;;  %2220 = vpow2.f32 %v1314_v17  ;;  %1633 = vmatprep.mubr.f32.mxu0 %v2193_v4  ;;  %v1161_v57 = vsub.f32 %v3064_v22, %v1072_v54  ;;  %v1343_v25 = vadd.f32 %v2193_v4, %v2191_v36 }
 0x38e   : > { %v3247_v8 = vpop.eup %2196  ;;  %2222 = vpow2.f32 %v1232_v41  ;;  %v1316_v0 = vmul.f32 1.442695, %v1200_v19  ;;  %v1318_v42 = vmul.f32 1.442695, %v1201_v55  ;;  %1634 = vmatmul.mubr.f32.gmra.mxu0 %v2191_v36  ;;  %v1391_v41 = vadd.f32 %v3201_v2, %v3198_v1 }
 0x38f   : > { %v1236_v61 = vmul.f32 1.442695, %v1160_v52  ;;  %v2199_v31 = vpop.eup %2198  ;;  %2224 = vpow2.f32 %v1234_v37  ;;  %v1238_v11 = vmul.f32 1.442695, %v1161_v57  ;;  %1344 = vadd.xlane.f32.xlu1 %v1343_v25  ;;  %1738 = vmatprep.mubr.f32.mxu1 %v3247_v8  ;;  %v1135_v29 = vpop.xlane.xlu1 %1134  ;;  %v3569_v52 = vld [vmem:[#allocation16_spill] sm:$0xff]  ;;  %v3570_v25 = vld [vmem:[#allocation17_spill] sm:$0xff]  ;;  %v1397_v1 = vadd.f32 %v3217_v14, %v3214_v5 }
 0x390   : > { %v2201_v48 = vpop.eup %2200  ;;  %2226 = vpow2.f32 %v1316_v0  ;;  %v1202_v28 = vsub.f32 %v3085_v26, %v1135_v29  ;;  %v1203_v22 = vsub.f32 %v3094_v34, %v1135_v29  ;;  %1739 = vmatmul.mubr.f32.gmra.mxu1 %v3244_v24  ;;  %v1400_v5 = vadd.f32 %v3227_v39, %v3224_v9 }
 0x391   : > { %v3253_v44 = vpop.eup %2202  ;;  %2228 = vpow2.f32 %v1318_v42  ;;  %1638 = vmatprep.mubr.f32.mxu0 %v2201_v48  ;;  %v1346_v63 = vadd.f32 %v2201_v48, %v2199_v31  ;;  %v1406_v39 = vadd.f32 %v3247_v8, %v3244_v24 }
 0x392   : > { %v3255_v3 = vpop.eup %2204  ;;  %2230 = vpow2.f32 %v1236_v61  ;;  %v1320_v10 = vmul.f32 1.442695, %v1202_v28  ;;  %v1322_v50 = vmul.f32 1.442695, %v1203_v22  ;;  %1639 = vmatmul.mubr.f32.gmra.mxu0 %v2199_v31  ;;  %v3571_v22 = vld [vmem:[#allocation18_spill] sm:$0xff] }
 0x393   : > { %v2207_v49 = vpop.eup %2206  ;;  %2232 = vpow2.f32 %v1238_v11  ;;  %1347 = vadd.xlane.f32.xlu0 %v1346_v63  ;;  %1743 = vmatprep.mubr.f32.mxu1 %v3255_v3  ;;  %v1138_v26 = vpop.xlane.xlu0 %1137 }
 0x394   : > { %v2209_v34 = vpop.eup %2208  ;;  %2234 = vpow2.f32 %v1320_v10  ;;  %v1204_v60 = vsub.f32 %v3099_v6, %v1138_v26  ;;  %v1205_v12 = vsub.f32 %v3106_v23, %v1138_v26  ;;  %1744 = vmatmul.mubr.f32.gmra.mxu1 %v3253_v44  ;;  %v3567_v23 = vld [vmem:[#allocation14_spill] sm:$0xff]  ;;  %v3572_v10 = vld [vmem:[#allocation19_spill] sm:$0xff] }
 0x395   : > { %v3261_v43 = vpop.eup %2210  ;;  %2236 = vpow2.f32 %v1322_v50  ;;  %1643 = vmatprep.mubr.f32.mxu0 %v2209_v34  ;;  %v1349_v32 = vadd.f32 %v2209_v34, %v2207_v49 }
 0x396   : > { %v3263_v38 = vpop.eup %2212  ;;  %v1324_v20 = vmul.f32 1.442695, %v1204_v60  ;;  %v1326_v59 = vmul.f32 1.442695, %v1205_v12  ;;  %1644 = vmatmul.mubr.f32.gmra.mxu0 %v2207_v49 }
 0x397   : > { %v2215_v7 = vpop.eup %2214  ;;  %1350 = vadd.xlane.f32.xlu1 %v1349_v32  ;;  %1748 = vmatprep.mubr.f32.mxu1 %v3263_v38  ;;  %v1141_v15 = vpop.xlane.xlu1 %1140  ;;  %v1403_v32 = vadd.f32 %v3237_v30, %v3234_v45  ;;  %v1409_v45 = vadd.f32 %v3255_v3, %v3253_v44  ;;  %v1412_v24 = vadd.f32 %v3263_v38, %v3261_v43 }
 0x398   : > { %v2217_v6 = vpop.eup %2216  ;;  %2238 = vpow2.f32 %v1324_v20  ;;  %v1206_v53 = vsub.f32 %v3567_v23, %v1141_v15  ;;  %v1207_v21 = vsub.f32 %v3568_v51, %v1141_v15  ;;  %1749 = vmatmul.mubr.f32.gmra.mxu1 %v3261_v43 }
 0x399   : > { %v3269_v17 = vpop.eup %2218  ;;  %2240 = vpow2.f32 %v1326_v59  ;;  %1648 = vmatprep.mubr.f32.mxu0 %v2217_v6  ;;  %v1352_v36 = vadd.f32 %v2217_v6, %v2215_v7 }
 0x39a   : > { %v3273_v37 = vpop.eup %2220  ;;  %v1328_v33 = vmul.f32 1.442695, %v1206_v53  ;;  %v1330_v54 = vmul.f32 1.442695, %v1207_v21  ;;  %1649 = vmatmul.mubr.f32.gmra.mxu0 %v2215_v7 }
 0x39b   : > { %v2223_v4 = vpop.eup %2222  ;;  %1392 = vadd.xlane.f32.xlu1 %v1391_v41  ;;  %1353 = vadd.xlane.f32.xlu0 %v1352_v36  ;;  %v1144_v19 = vpop.xlane.xlu0 %1143 }
 0x39c   : > { %v2225_v55 = vpop.eup %2224  ;;  %2242 = vpow2.f32 %v1328_v33  ;;  %1753 = vmatprep.mubr.f32.mxu1 %v3273_v37  ;;  %v1208_v57 = vsub.f32 %v3569_v52, %v1144_v19  ;;  %v1209_v0 = vsub.f32 %v3570_v25, %v1144_v19 }
 0x39d   : > { %v3278_v42 = vpop.eup %2226  ;;  %2244 = vpow2.f32 %v1330_v54  ;;  %1653 = vmatprep.mubr.f32.mxu0 %v2225_v55  ;;  %1754 = vmatmul.mubr.f32.gmra.mxu1 %v3269_v17  ;;  %v1355_v2 = vadd.f32 %v2225_v55, %v2223_v4 }
 0x39e   : > { %v2229_v61 = vpop.eup %2228  ;;  %v1332_v31 = vmul.f32 1.442695, %v1208_v57  ;;  %v1334_v11 = vmul.f32 1.442695, %v1209_v0  ;;  %1654 = vmatmul.mubr.f32.gmra.mxu0 %v2223_v4 }
 0x39f   : > { %v2231_v29 = vpop.eup %2230  ;;  %1398 = vadd.xlane.f32.xlu1 %v1397_v1  ;;  %1356 = vadd.xlane.f32.xlu0 %v1355_v2  ;;  %v1147_v48 = vpop.xlane.xlu1 %1146 }
 0x3a0   : > { %v2233_v28 = vpop.eup %2232  ;;  %2246 = vpow2.f32 %v1332_v31  ;;  %1758 = vmatprep.mubr.f32.mxu1 %v2229_v61  ;;  %v1210_v63 = vsub.f32 %v3571_v22, %v1147_v48  ;;  %v1211_v50 = vsub.f32 %v3572_v10, %v1147_v48 }
 0x3a1   : > { %v2235_v49 = vpop.eup %2234  ;;  %2248 = vpow2.f32 %v1334_v11  ;;  %1658 = vmatprep.mubr.f32.mxu0 %v2233_v28  ;;  %1759 = vmatmul.mubr.f32.gmra.mxu1 %v3278_v42  ;;  %v1358_v14 = vadd.f32 %v2233_v28, %v2231_v29 }
 0x3a2   : > { %v2237_v26 = vpop.eup %2236  ;;  %v1336_v34 = vmul.f32 1.442695, %v1210_v63  ;;  %v1338_v60 = vmul.f32 1.442695, %v1211_v50  ;;  %1659 = vmatmul.mubr.f32.gmra.mxu0 %v2231_v29 }
 0x3a3   : > { %1401 = vadd.xlane.f32.xlu1 %v1400_v5  ;;  %1359 = vadd.xlane.f32.xlu0 %v1358_v14  ;;  %v1421_v44 = vadd.f32 %v2237_v26, %v2235_v49  ;;  %v3326_v36 = vpop.permute.xlu1 %1892 }
 0x3a4   : > { %2250 = vpow2.f32 %v1336_v34  ;;  %1763 = vmatprep.mubr.f32.mxu1 %v2237_v26 }
 0x3a5   : > { %v2239_v12 = vpop.eup %2238  ;;  %2252 = vpow2.f32 %v1338_v60  ;;  %1764 = vmatmul.mubr.f32.gmra.mxu1 %v2235_v49 }
 0x3a6   : > { %v2241_v20 = vpop.eup %2240 }
 0x3a7   : > { %1404 = vadd.xlane.f32.xlu1 %v1403_v32  ;;  %1362 = vadd.xlane.f32.xlu0 %v3155_v13  ;;  %v1424_v3 = vadd.f32 %v2241_v20, %v2239_v12 }
 0x3a8   : > { %1768 = vmatprep.mubr.f32.mxu1 %v2241_v20 }
 0x3a9   : > { %v2243_v9 = vpop.eup %2242  ;;  %1769 = vmatmul.mubr.f32.gmra.mxu1 %v2239_v12 }
 0x3aa   : > { %v2245_v59 = vpop.eup %2244 }
 0x3ab   : > { %1407 = vadd.xlane.f32.xlu1 %v1406_v39  ;;  %1365 = vadd.xlane.f32.xlu0 %v3159_v16  ;;  %v1415_v16 = vadd.f32 %v3273_v37, %v3269_v17 }
 0x3ac   : > { %1773 = vmatprep.mubr.f32.mxu1 %v2245_v59 }
 0x3ad   : > { %v2247_v7 = vpop.eup %2246  ;;  %1774 = vmatmul.mubr.f32.gmra.mxu1 %v2243_v9 }
 0x3ae   : > { %v2249_v30 = vpop.eup %2248 }
 0x3af   : > { %1410 = vadd.xlane.f32.xlu1 %v1409_v45  ;;  %1368 = vadd.xlane.f32.xlu0 %v3163_v62  ;;  %v1418_v62 = vadd.f32 %v2229_v61, %v3278_v42  ;;  %v1430_v43 = vadd.f32 %v2249_v30, %v2247_v7 }
 0x3b0   : > { %1778 = vmatprep.mubr.f32.mxu1 %v2249_v30 }
 0x3b1   : > { %v2251_v13 = vpop.eup %2250  ;;  %1779 = vmatmul.mubr.f32.gmra.mxu1 %v2247_v7 }
 0x3b2   : > { %v2253_v8 = vpop.eup %2252 }
 0x3b3   : > { %1413 = vadd.xlane.f32.xlu1 %v1412_v24  ;;  %1371 = vadd.xlane.f32.xlu0 %v3167_v58  ;;  %v1427_v58 = vadd.f32 %v2245_v59, %v2243_v9 }
 0x3b4   : > { %1783 = vmatprep.mubr.f32.mxu1 %v2253_v8 }
 0x3b5   : > { %1784 = vmatmul.mubr.f32.gmra.mxu1 %v2251_v13 }
 0x3b7   : > { %1416 = vadd.xlane.f32.xlu1 %v1415_v16  ;;  %1374 = vadd.xlane.f32.xlu0 %v3171_v18  ;;  %v1433_v18 = vadd.f32 %v2253_v8, %v2251_v13 }
 0x3bb   : > { %1419 = vadd.xlane.f32.xlu1 %v1418_v62  ;;  %1377 = vadd.xlane.f32.xlu0 %v3175_v46 }
 0x3bf   : > { %1422 = vadd.xlane.f32.xlu1 %v1421_v44  ;;  %1380 = vadd.xlane.f32.xlu0 %v3179_v47 }
 0x3c3   : > { %1383 = vadd.xlane.f32.xlu0 %v3183_v27  ;;  %1425 = vadd.xlane.f32.xlu1 %v1424_v3 }
 0x3c7   : > { %1386 = vadd.xlane.f32.xlu0 %v3187_v35  ;;  %1428 = vadd.xlane.f32.xlu1 %v1427_v58 }
 0x3cb   : > { %1389 = vadd.xlane.f32.xlu0 %v3193_v40  ;;  %1431 = vadd.xlane.f32.xlu1 %v1430_v43 }
 0x3cf   : > { %1395 = vadd.xlane.f32.xlu0 %v3209_v56  ;;  %1434 = vadd.xlane.f32.xlu1 %v1433_v18 }
 0x414   : > { %v3310_v46 = vpop.f32.mrf.mxu1  ;;  %v1342_v27 = vpop.xlane.xlu0 %1341 }
 0x415   : > { %2254 = vrcp.f32 %v1342_v27 }
 0x416   : > { %v1667_v38 = vpop.f32.mrf.mxu1 }
 0x418   : > { %v3312_v47 = vpop.f32.mrf.mxu1  ;;  %v1345_v19 = vpop.xlane.xlu1 %1344 }
 0x419   : > { %2256 = vrcp.f32 %v1345_v19 }
 0x41a   : > { %v1672_v15 = vpop.f32.mrf.mxu1 }
 0x41c   : > { %v3314_v6 = vpop.f32.mrf.mxu1  ;;  %v1348_v35 = vpop.xlane.xlu0 %1347 }
 0x41d   : > { %2258 = vrcp.f32 %v1348_v35 }
 0x41e   : > { %v1677_v23 = vpop.f32.mrf.mxu1 }
 0x420   : > { %v3316_v53 = vpop.f32.mrf.mxu1  ;;  %v1351_v25 = vpop.xlane.xlu1 %1350 }
 0x421   : > { %2260 = vrcp.f32 %v1351_v25 }
 0x422   : > { %v1682_v51 = vpop.f32.mrf.mxu1  ;;  %v2255_v28 = vpop.eup %2254 }
 0x423   : > { %v1468_v50 = vmul.f32 %v2255_v28, %v1342_v27 }
 0x424   : > { %v3318_v40 = vpop.xlane.xlu0 %1353  ;;  %v3320_v21 = vpop.f32.mrf.mxu1 }
 0x425   : > { %v3344_v31 = vpop.xlane.xlu1 %1392  ;;  %2262 = vrcp.f32 %v3318_v40  ;;  %v1500_v34 = vsub.f32 2.0, %v1468_v50 }
 0x426   : > { %v1687_v56 = vpop.f32.mrf.mxu1  ;;  %v2257_v5 = vpop.eup %2256 }
 0x427   : > { %v1469_v12 = vmul.f32 %v2257_v5, %v1345_v19  ;;  %v1532_v59 = vmul.f32 %v2255_v28, %v1500_v34 }
 0x428   : > { %v3322_v17 = vpop.xlane.xlu0 %1356  ;;  %v3324_v41 = vpop.f32.mrf.mxu1 }
 0x429   : > { %v3350_v63 = vpop.xlane.xlu1 %1398  ;;  %2264 = vrcp.f32 %v3322_v17  ;;  %v1501_v45 = vsub.f32 2.0, %v1469_v12 }
 0x42a   : > { %v1692_v37 = vpop.f32.mrf.mxu1  ;;  %v2259_v20 = vpop.eup %2258 }
 0x42b   : > { %v1470_v30 = vmul.f32 %v2259_v20, %v1348_v35  ;;  %v1533_v38 = vmul.f32 %v2257_v5, %v1501_v45 }
 0x42c   : > { %v3328_v33 = vpop.xlane.xlu0 %1359  ;;  %v3330_v54 = vpop.f32.mrf.mxu1 }
 0x42d   : > { %v3362_v32 = vpop.xlane.xlu1 %1401  ;;  %2266 = vrcp.f32 %v3328_v33  ;;  %v1502_v43 = vsub.f32 2.0, %v1470_v30 }
 0x42e   : > { %v1697_v4 = vpop.f32.mrf.mxu1  ;;  %v2261_v24 = vpop.eup %2260 }
 0x42f   : > { %v1471_v18 = vmul.f32 %v2261_v24, %v1351_v25  ;;  %v1534_v25 = vmul.f32 %v2259_v20, %v1502_v43 }
 0x430   : > { %v3332_v55 = vpop.xlane.xlu0 %1362  ;;  %v3334_v52 = vpop.f32.mrf.mxu1 }
 0x431   : > { %2268 = vrcp.f32 %v3332_v55  ;;  %v3370_v62 = vpop.xlane.xlu1 %1404  ;;  %v1503_v4 = vsub.f32 2.0, %v1471_v18 }
 0x432   : > { %v1702_v57 = vpop.f32.mrf.mxu1  ;;  %v2263_v15 = vpop.eup %2262 }
 0x433   : > { %v1472_v19 = vmul.f32 %v2263_v15, %v3318_v40  ;;  %v1535_v40 = vmul.f32 %v2261_v24, %v1503_v4 }
 0x434   : > { %v3336_v0 = vpop.xlane.xlu0 %1365  ;;  %v3338_v42 = vpop.f32.mrf.mxu1 }
 0x435   : > { %2270 = vrcp.f32 %v3336_v0  ;;  %v3383_v57 = vpop.xlane.xlu1 %1407  ;;  %v1504_v34 = vsub.f32 2.0, %v1472_v19 }
 0x436   : > { %v1707_v1 = vpop.f32.mrf.mxu1  ;;  %2272 = vrcp.f32 %v3344_v31 }
 0x437   : > { %v2265_v1 = vpop.eup %2264 }
 0x438   : > { %v3340_v2 = vpop.xlane.xlu0 %1368  ;;  %v3342_v61 = vpop.f32.mrf.mxu1  ;;  %v1473_v12 = vmul.f32 %v2265_v1, %v3322_v17  ;;  %v1536_v17 = vmul.f32 %v2263_v15, %v1504_v34 }
 0x439   : > { %2274 = vrcp.f32 %v3340_v2  ;;  %v3389_v30 = vpop.xlane.xlu1 %1410 }
 0x43a   : > { %v1712_v11 = vpop.f32.mrf.mxu1  ;;  %v1505_v43 = vsub.f32 2.0, %v1473_v12 }
 0x43c   : > { %v3346_v29 = vpop.xlane.xlu0 %1371  ;;  %v3348_v48 = vpop.f32.mrf.mxu1 }
 0x43e   : > { %v1717_v22 = vpop.f32.mrf.mxu1 }
 0x440   : > { %v3352_v10 = vpop.xlane.xlu0 %1374  ;;  %v3354_v49 = vpop.f32.mrf.mxu1 }
 0x442   : > { %v1722_v14 = vpop.f32.mrf.mxu1 }
 0x444   : > { %v3357_v26 = vpop.xlane.xlu0 %1377  ;;  %v3359_v60 = vpop.f32.mrf.mxu1 }
 0x446   : > { %v1727_v9 = vpop.f32.mrf.mxu1 }
 0x447   : > { %v2267_v9 = vpop.eup %2266 }
 0x448   : > { %v3364_v39 = vpop.xlane.xlu0 %1380  ;;  %v3366_v7 = vpop.f32.mrf.mxu1  ;;  %v1474_v18 = vmul.f32 %v2267_v9, %v3328_v33  ;;  %v1537_v33 = vmul.f32 %v2265_v1, %v1505_v43 }
 0x449   : > { %v2269_v20 = vpop.eup %2268 }
 0x44a   : > { %v1630_v13 = vpop.f32.mrf.mxu0  ;;  %v1732_v16 = vpop.f32.mrf.mxu1  ;;  %v1475_v24 = vmul.f32 %v2269_v20, %v3332_v55  ;;  %v1506_v19 = vsub.f32 2.0, %v1474_v18 }
 0x44b   : > { %v1789_v8 = vmul.f32 %v1630_v13, %v1532_v59 }
 0x44c   : > { %v3372_v44 = vpop.xlane.xlu0 %1383  ;;  %v1632_v3 = vpop.f32.mrf.mxu0  ;;  %v1507_v15 = vsub.f32 2.0, %v1475_v24 }
 0x44d   : > { %1821 = vxpose.xlu0.b32.start [1/16] (narrow) %v1789_v8, 8  ;;  %v3374_v58 = vpop.f32.mrf.mxu1 }
 0x44e   : > { %v1635_v27 = vpop.f32.mrf.mxu0 }
 0x44f   : > { %v1737_v23 = vpop.f32.mrf.mxu1  ;;  %v1790_v35 = vmul.f32 %v1635_v27, %v1533_v38 }
 0x450   : > { %v3377_v51 = vpop.xlane.xlu0 %1386  ;;  %v1637_v56 = vpop.f32.mrf.mxu0 }
 0x451   : > { %v3379_v37 = vpop.f32.mrf.mxu1  ;;  %1822 = vxpose.xlu0.b32.cont [2/16] (narrow) %v1790_v35, 8  ;;  %v2271_v23 = vpop.eup %2270 }
 0x452   : > { %v1640_v11 = vpop.f32.mrf.mxu0  ;;  %v1476_v55 = vmul.f32 %v2271_v23, %v3336_v0 }
 0x453   : > { %v1742_v28 = vpop.f32.mrf.mxu1  ;;  %v1791_v22 = vmul.f32 %v1640_v11, %v1534_v25  ;;  %v3400_v25 = vpop.xlane.xlu1 %1413 }
 0x454   : > { %v1390_v50 = vpop.xlane.xlu0 %1389  ;;  %v1642_v5 = vpop.f32.mrf.mxu0 }
 0x455   : > { %v3386_v14 = vpop.f32.mrf.mxu1  ;;  %2276 = vrcp.f32 %v1390_v50  ;;  %1823 = vxpose.xlu0.b32.cont [3/16] (narrow) %v1791_v22, 8  ;;  %v2273_v11 = vpop.eup %2272 }
 0x456   : > { %v1645_v59 = vpop.f32.mrf.mxu0  ;;  %2278 = vrcp.f32 %v3346_v29  ;;  %v2275_v5 = vpop.eup %2274 }
 0x457   : > { %v1747_v45 = vpop.f32.mrf.mxu1  ;;  %v1792_v13 = vmul.f32 %v1645_v59, %v1535_v40  ;;  %v1485_v59 = vmul.f32 %v2273_v11, %v3344_v31  ;;  %v1477_v0 = vmul.f32 %v2275_v5, %v3340_v2 }
 0x458   : > { %v1396_v8 = vpop.xlane.xlu0 %1395  ;;  %v1647_v16 = vpop.f32.mrf.mxu0  ;;  %v1538_v45 = vmul.f32 %v2267_v9, %v1506_v19 }
 0x459   : > { %v3392_v3 = vpop.f32.mrf.mxu1  ;;  %2280 = vrcp.f32 %v1396_v8  ;;  %1824 = vxpose.xlu0.b32.cont [4/16] (narrow) %v1792_v13, 8  ;;  %v1539_v13 = vmul.f32 %v2269_v20, %v1507_v15  ;;  %v1508_v16 = vsub.f32 2.0, %v1476_v55  ;;  %v1517_v9 = vsub.f32 2.0, %v1485_v59 }
 0x45a   : > { %2282 = vrcp.f32 %v3350_v63  ;;  %v1650_v38 = vpop.f32.mrf.mxu0 }
 0x45b   : > { %v1752_v27 = vpop.f32.mrf.mxu1  ;;  %2284 = vrcp.f32 %v3352_v10  ;;  %v1793_v35 = vmul.f32 %v1650_v38, %v1536_v17  ;;  %v3410_v17 = vpop.xlane.xlu1 %1416  ;;  %v1796_v20 = vmul.f32 %v3310_v46, %v1539_v13  ;;  %v1540_v2 = vmul.f32 %v2271_v23, %v1508_v16 }
 0x45c   : > { %v1652_v56 = vpop.f32.mrf.mxu0  ;;  %2286 = vrcp.f32 %v3362_v32  ;;  %v1549_v13 = vmul.f32 %v2273_v11, %v1517_v9 }
 0x45d   : > { %v3398_v4 = vpop.f32.mrf.mxu1  ;;  %1825 = vxpose.xlu0.b32.cont [5/16] (narrow) %v1793_v35, 8  ;;  %2288 = vrcp.f32 %v3357_v26  ;;  %v1797_v23 = vmul.f32 %v3312_v47, %v1540_v2 }
 0x45e   : > { %v1655_v28 = vpop.f32.mrf.mxu0  ;;  %2290 = vrcp.f32 %v3370_v62 }
 0x45f   : > { %v1757_v22 = vpop.f32.mrf.mxu1  ;;  %v1794_v34 = vmul.f32 %v1655_v28, %v1537_v33  ;;  %2292 = vrcp.f32 %v3364_v39  ;;  %v1509_v33 = vsub.f32 2.0, %v1477_v0  ;;  %v3425_v16 = vpop.xlane.xlu1 %1419 }
 0x460   : > { %v1657_v12 = vpop.f32.mrf.mxu0  ;;  %2294 = vrcp.f32 %v3383_v57 }
 0x461   : > { %v3405_v40 = vpop.f32.mrf.mxu1  ;;  %1826 = vxpose.xlu0.b32.cont [6/16] (narrow) %v1794_v34, 8  ;;  %2296 = vrcp.f32 %v3372_v44 }
 0x462   : > { %v2277_v1 = vpop.eup %2276  ;;  %v1660_v43 = vpop.f32.mrf.mxu0  ;;  %2298 = vrcp.f32 %v3389_v30 }
 0x463   : > { %v1762_v18 = vpop.f32.mrf.mxu1  ;;  %v1484_v24 = vmul.f32 %v2277_v1, %v1390_v50  ;;  %v1795_v38 = vmul.f32 %v1660_v43, %v1538_v45  ;;  %v2279_v27 = vpop.eup %2278  ;;  %2300 = vrcp.f32 %v3377_v51 }
 0x464   : > { %v1662_v35 = vpop.f32.mrf.mxu0  ;;  %v1478_v28 = vmul.f32 %v2279_v27, %v3346_v29  ;;  %2302 = vrcp.f32 %v3400_v25  ;;  %v3436_v2 = vpop.xlane.xlu1 %1422 }
 0x465   : > { %v3413_v31 = vpop.f32.mrf.mxu1  ;;  %v1516_v56 = vsub.f32 2.0, %v1484_v24  ;;  %1827 = vxpose.xlu0.b32.cont [7/16] (narrow) %v1795_v38, 8  ;;  %2304 = vrcp.f32 %v3410_v17 }
 0x466   : > { %v2281_v19 = vpop.eup %2280  ;;  %2306 = vrcp.f32 %v3425_v16 }
 0x467   : > { %v1767_v15 = vpop.f32.mrf.mxu1  ;;  %v2283_v55 = vpop.eup %2282  ;;  %v1548_v50 = vmul.f32 %v2277_v1, %v1516_v56  ;;  %v1486_v22 = vmul.f32 %v2281_v19, %v1396_v8  ;;  %v1541_v1 = vmul.f32 %v2275_v5, %v1509_v33  ;;  %v1510_v8 = vsub.f32 2.0, %v1478_v28 }
 0x468   : > { %v2285_v34 = vpop.eup %2284  ;;  %v1487_v46 = vmul.f32 %v2283_v55, %v3350_v63  ;;  %v1806_v63 = vmul.f32 %v3348_v48, %v1549_v13  ;;  %2308 = vrcp.f32 %v3436_v2 }
 0x469   : > { %v3419_v12 = vpop.f32.mrf.mxu1  ;;  %v1518_v59 = vsub.f32 2.0, %v1486_v22  ;;  %1828 = vxpose.xlu0.b32.cont [8/16] (narrow) %v1796_v20, 8  ;;  %v1805_v45 = vmul.f32 %v3342_v61, %v1548_v50  ;;  %v2287_v0 = vpop.eup %2286  ;;  %v1479_v43 = vmul.f32 %v2285_v34, %v3352_v10  ;;  %v1798_v35 = vmul.f32 %v3314_v6, %v1541_v1 }
 0x46a   : > { %v2289_v18 = vpop.eup %2288  ;;  %v1519_v24 = vsub.f32 2.0, %v1487_v46  ;;  %v1488_v11 = vmul.f32 %v2287_v0, %v3362_v32  ;;  %v1542_v10 = vmul.f32 %v2279_v27, %v1510_v8 }
 0x46b   : > { %v1772_v29 = vpop.f32.mrf.mxu1  ;;  %1853 = vxpose.xlu1.b32.start [1/16] (narrow) %v1805_v45, 8  ;;  %v1550_v47 = vmul.f32 %v2281_v19, %v1518_v59  ;;  %v2291_v5 = vpop.eup %2290  ;;  %v1511_v9 = vsub.f32 2.0, %v1479_v43  ;;  %v1480_v56 = vmul.f32 %v2289_v18, %v3357_v26 }
 0x46c   : > { %v2293_v20 = vpop.eup %2292  ;;  %v1520_v32 = vsub.f32 2.0, %v1488_v11  ;;  %v1489_v33 = vmul.f32 %v2291_v5, %v3370_v62  ;;  %v1551_v15 = vmul.f32 %v2283_v55, %v1519_v24  ;;  %v1799_v28 = vmul.f32 %v3316_v53, %v1542_v10 }
 0x46d   : > { %v3429_v61 = vpop.f32.mrf.mxu1  ;;  %1829 = vxpose.xlu0.b32.cont [9/16] (narrow) %v1797_v23, 8  ;;  %v1807_v19 = vmul.f32 %v3354_v49, %v1550_v47  ;;  %v2295_v27 = vpop.eup %2294  ;;  %v1543_v26 = vmul.f32 %v2285_v34, %v1511_v9  ;;  %v1512_v50 = vsub.f32 2.0, %v1480_v56  ;;  %v1481_v22 = vmul.f32 %v2293_v20, %v3364_v39 }
 0x46e   : > { %v2297_v59 = vpop.eup %2296  ;;  %v1808_v49 = vmul.f32 %v3359_v60, %v1551_v15  ;;  %v1521_v46 = vsub.f32 2.0, %v1489_v33  ;;  %v1490_v62 = vmul.f32 %v2295_v27, %v3383_v57  ;;  %v1552_v55 = vmul.f32 %v2287_v0, %v1520_v32  ;;  %v3450_v23 = vpop.xlane.xlu1 %1425 }
 0x46f   : > { %v1777_v38 = vpop.f32.mrf.mxu1  ;;  %1854 = vxpose.xlu1.b32.cont [2/16] (narrow) %v1806_v63, 8  ;;  %v2299_v34 = vpop.eup %2298  ;;  %v1800_v13 = vmul.f32 %v3320_v21, %v1543_v26  ;;  %v1544_v39 = vmul.f32 %v2289_v18, %v1512_v50  ;;  %v1513_v29 = vsub.f32 2.0, %v1481_v22  ;;  %v1482_v1 = vmul.f32 %v2297_v59, %v3372_v44 }
 0x470   : > { %v2301_v8 = vpop.eup %2300  ;;  %v1809_v60 = vmul.f32 %v3366_v7, %v1552_v55  ;;  %v1522_v43 = vsub.f32 2.0, %v1490_v62  ;;  %v1491_v57 = vmul.f32 %v2299_v34, %v3389_v30  ;;  %v1553_v0 = vmul.f32 %v2291_v5, %v1521_v46 }
 0x471   : > { %v3438_v48 = vpop.f32.mrf.mxu1  ;;  %1830 = vxpose.xlu0.b32.cont [10/16] (narrow) %v1798_v35, 8  ;;  %v2303_v63 = vpop.eup %2302  ;;  %v1801_v47 = vmul.f32 %v3324_v41, %v1544_v39  ;;  %v1545_v24 = vmul.f32 %v2293_v20, %v1513_v29  ;;  %v1514_v21 = vsub.f32 2.0, %v1482_v1  ;;  %v1483_v18 = vmul.f32 %v2301_v8, %v3377_v51 }
 0x472   : > { %v1429_v44 = vpop.xlane.xlu1 %1428  ;;  %v1810_v11 = vmul.f32 %v3374_v58, %v1553_v0  ;;  %v1523_v7 = vsub.f32 2.0, %v1491_v57  ;;  %v1492_v38 = vmul.f32 %v2303_v63, %v3400_v25  ;;  %v1554_v35 = vmul.f32 %v2295_v27, %v1522_v43  ;;  %v2305_v30 = vpop.eup %2304 }
 0x473   : > { %v1782_v6 = vpop.f32.mrf.mxu1  ;;  %1855 = vxpose.xlu1.b32.cont [3/16] (narrow) %v1807_v19, 8  ;;  %v1802_v10 = vmul.f32 %v3330_v54, %v1545_v24  ;;  %2310 = vrcp.f32 %v3450_v23  ;;  %v1546_v5 = vmul.f32 %v2297_v59, %v1514_v21  ;;  %v1515_v41 = vsub.f32 2.0, %v1483_v18  ;;  %v2307_v58 = vpop.eup %2306  ;;  %v3573_v21 = vld [vmem:[#allocation5_spill] sm:$0xff] }
 0x474   : > { %v1811_v9 = vmul.f32 %v3379_v37, %v1554_v35  ;;  %v1524_v51 = vsub.f32 2.0, %v1492_v38  ;;  %v1555_v20 = vmul.f32 %v2299_v34, %v1523_v7  ;;  %v1493_v19 = vmul.f32 %v2305_v30, %v3410_v17 }
 0x475   : > { %v3445_v45 = vpop.f32.mrf.mxu1  ;;  %1831 = vxpose.xlu0.b32.cont [11/16] (narrow) %v1799_v28, 8  ;;  %v1803_v25 = vmul.f32 %v3334_v52, %v1546_v5  ;;  %2312 = vrcp.f32 %v1429_v44  ;;  %v1547_v32 = vmul.f32 %v2301_v8, %v1515_v41  ;;  %v2309_v15 = vpop.eup %2308  ;;  %v1494_v37 = vmul.f32 %v2307_v58, %v3425_v16 }
 0x476   : > { %v1432_v56 = vpop.xlane.xlu1 %1431  ;;  %v1812_v54 = vmul.f32 %v3386_v14, %v1555_v20  ;;  %v1556_v33 = vmul.f32 %v2303_v63, %v1524_v51  ;;  %v1525_v6 = vsub.f32 2.0, %v1493_v19  ;;  %v1495_v26 = vmul.f32 %v2309_v15, %v3436_v2 }
 0x477   : > { %v1787_v53 = vpop.f32.mrf.mxu1  ;;  %1856 = vxpose.xlu1.b32.cont [4/16] (narrow) %v1808_v49, 8  ;;  %v1804_v27 = vmul.f32 %v3338_v42, %v1547_v32  ;;  %2314 = vrcp.f32 %v1432_v56  ;;  %v1526_v52 = vsub.f32 2.0, %v1494_v37  ;;  %v2384_v63 = vmov 839922192  }
 0x478   : > { %v1813_v17 = vmul.f32 %v3392_v3, %v1556_v33  ;;  %v1557_v50 = vmul.f32 %v2305_v30, %v1525_v6  ;;  %v1527_v59 = vsub.f32 2.0, %v1495_v26 }
 0x479   : > { %1832 = vxpose.xlu0.b32.cont [12/16] (narrow) %v1800_v13, 8  ;;  %v1558_v49 = vmul.f32 %v2307_v58, %v1526_v52 }
 0x47a   : > { %v1435_v28 = vpop.xlane.xlu1 %1434  ;;  %v1814_v22 = vmul.f32 %v3398_v4, %v1557_v50  ;;  %v1559_v55 = vmul.f32 %v2309_v15, %v1527_v59 }
 0x47b   : > { %1857 = vxpose.xlu1.b32.cont [5/16] (narrow) %v1809_v60, 8  ;;  %2316 = vrcp.f32 %v1435_v28  ;;  %v1815_v46 = vmul.f32 %v3405_v40, %v1558_v49 }
 0x47c   : > { %v1816_v2 = vmul.f32 %v3413_v31, %v1559_v55 }
 0x47d   : > { %1833 = vxpose.xlu0.b32.cont [13/16] (narrow) %v1801_v47, 8 }
 0x47f   : > { %1858 = vxpose.xlu1.b32.cont [6/16] (narrow) %v1810_v11, 8 }
 0x480   : > { %v2311_v14 = vpop.eup %2310 }
 0x481   : > { %1834 = vxpose.xlu0.b32.cont [14/16] (narrow) %v1802_v10, 8  ;;  %v1496_v16 = vmul.f32 %v2311_v14, %v3450_v23 }
 0x482   : > { %v2313_v42 = vpop.eup %2312 }
 0x483   : > { %1859 = vxpose.xlu1.b32.cont [7/16] (narrow) %v1811_v9, 8  ;;  %v1528_v62 = vsub.f32 2.0, %v1496_v16  ;;  %v1497_v3 = vmul.f32 %v2313_v42, %v1429_v44  ;;  %v337_v44 = vld [vmem:[%s3518_s0] sm:$0xff] }
 0x484   : > { %v2315_v53 = vpop.eup %2314 }
 0x485   : > { %1835 = vxpose.xlu0.b32.cont [15/16] (narrow) %v1803_v25, 8  ;;  %v1529_v34 = vsub.f32 2.0, %v1497_v3  ;;  %v1498_v13 = vmul.f32 %v2315_v53, %v1432_v56  ;;  %v1560_v39 = vmul.f32 %v2311_v14, %v1528_v62 }
 0x487   : > { %1860 = vxpose.xlu1.b32.cont [8/16] (narrow) %v1812_v54, 8  ;;  %v1817_v29 = vmul.f32 %v3419_v12, %v1560_v39  ;;  %v1530_v23 = vsub.f32 2.0, %v1498_v13  ;;  %v1561_v8 = vmul.f32 %v2313_v42, %v1529_v34  ;;  %v1895_v12 = vunpack.c.l.s4 %v2384_v63 }
 0x488   : > { %v2317_v4 = vpop.eup %2316 }
 0x489   : > { %1836 = vxpose.xlu0.b32.end [16/16] (narrow) %v1804_v27, 8  ;;  %v1499_v1 = vmul.f32 %v2317_v4, %v1435_v28  ;;  %v1818_v40 = vmul.f32 %v3429_v61, %v1561_v8  ;;  %v1562_v43 = vmul.f32 %v2315_v53, %v1530_v23  ;;  %v1896_v47 = vunpack.c.0.s8 %v1895_v12 }
 0x48b   : > { %1861 = vxpose.xlu1.b32.cont [9/16] (narrow) %v1813_v17, 8  ;;  %v1531_v60 = vsub.f32 2.0, %v1499_v1  ;;  %v1819_v31 = vmul.f32 %v3438_v48, %v1562_v43  ;;  %v1899_v18 = vsub.s32 %v1896_v47, %v3573_v21 }
 0x48d   : > { %v1563_v57 = vmul.f32 %v2317_v4, %v1531_v60 }
 0x48f   : > { %1862 = vxpose.xlu1.b32.cont [10/16] (narrow) %v1814_v22, 8  ;;  %v1820_v0 = vmul.f32 %v3445_v45, %v1563_v57  ;;  %v1900_v45 = vrot.slane %v3326_v36, %v1899_v18 }
 0x493   : > { %1863 = vxpose.xlu1.b32.cont [11/16] (narrow) %v1815_v46, 8 }
 0x497   : > { %1864 = vxpose.xlu1.b32.cont [12/16] (narrow) %v1816_v2, 8 }
 0x49b   : > { %1865 = vxpose.xlu1.b32.cont [13/16] (narrow) %v1817_v29, 8 }
 0x49f   : > { %1866 = vxpose.xlu1.b32.cont [14/16] (narrow) %v1818_v40, 8 }
 0x4a3   : > { %1867 = vxpose.xlu1.b32.cont [15/16] (narrow) %v1819_v31, 8 }
 0x4a7   : > { %1868 = vxpose.xlu1.b32.end [16/16] (narrow) %v1820_v0, 8 }
 0x4c9   : > { %v1837_v24 = vpop.trf.xlu0 }
 0x4e7   : > { %v1869_v61 = vpop.trf.xlu1 }
 0x4e8   : > { %v1887_v48 = vcombine.low %v1837_v24, %v1869_v61 }
 0x4ea   : > { %v1889_v11 = vadd.f32 %v1887_v48, %v337_v44 }
 0x4ec   : > { %v1902_v7 = vadd.f32 %v1900_v45, %v1889_v11 }
 0x4ee   : > { %1903 = vst [vmem:[%s298_s13] sm:$0xff] %v1902_v7 }
 0x4ef   : > { %2331 = shalt.err (!%p2328_p3)
}
 0x4f0   : > { %s2332_s26 = scalar_lea.hbm %s1917_s20, 128  ;;  %s2336_s12 = scalar_lea.hbm %s3526_s8, 256 }
 0x4f1   : > { %p2333_p4 = scmp.ne.s32.totalorder %s1917_s20, %s2332_s26  ;;  %p2337_p9 = scmp.lt.s32.totalorder %s1917_s20, %s3526_s8 }
 0x4f2   : > { %p2338_p10 = scmp.lt.s32.totalorder %s2336_s12, %s2332_s26 }
 0x4f3   : > { %p2334_p7 = pnand %p2333_p4, %p2469_p5 }
 0x4f4   : > { %p2339_p11 = por %p2338_p10, %p2337_p9 }
 0x4f5   : > { %p2335_p8 = pneg %p2334_p7 }
 0x4f7   : > { %p2340_p12 = pnand %p2339_p11, %p2335_p8 }
 0x4f9   : > { %2343 = shalt.err (!%p2340_p12)
}
 0x4fa   : > { %2079 = dma.vmem_to_hbm [thread:$0]  (%p2469_p5), %s1920_s17, 128, %s1917_s20, %s1905_s21  }
 0x4fb PF: > { %p2085_p13 = scmp.ge.s32.totalorder %s2378_s30, 2  ;;  %s1931_s19 = sand.u32 1, %s2366_s27  }
 0x4fc   : > { %s1932_s22 = scalar_lea.sflag [#allocation3], %s1931_s19 }
 0x4fd   : > { %p2082_p0 = pnand %p2085_p13, %p2473_p6 }
 0x4ff   : > { %p2083_p1 = pneg %p2082_p0 }
 0x501   : > { %2361 = dma.done.wait (%p2083_p1), %s1932_s22, 128  }
 0x502   : > { %2363 = vsyncadd (%p2083_p1), %s1932_s22, 4294967168  ;;  %p18_p2 = scmp.ge.s32.totalorder %s2456_s11, 4   ;;  %s3574_s27 = smov %s2370_s28 }
 0x503   : > { %s3575_s28 = smov %s2374_s29  ;;  %s3576_s29 = smov %s2467_s14 }
 0x504   : > { %s3577_s30 = smov %s2456_s11  ;;  %20 = sbr.rel (!%p18_p2) target bundleno = 3 (0x3), region = 87 }
 0x509   :  { %1937 = vsyncpa [#allocation3], 1 }
 0x50a   :  { %1939 = vsyncpa [#allocation3 + $0x1], 1 }

</bundles_post_ra>
